<compile_context>
chip_gen: v7x
topology: tpu7x:2x2x1
jax: 0.10.0
libtpu: 0.0.40
codegen_flags: <defaults>
</compile_context>

<pallas_src>
import math
from functools import partial

import jax
import jax.numpy as jnp
from jax.experimental import pallas as pl
from jax.experimental.pallas import tpu as pltpu


PARAM_ORDER = ("wqvk", "bqvk", "ln1_g", "ln1_b",
               "w1", "b1", "w2", "b2", "ln2_g", "ln2_b")


def _encoder_kernel(head_num, depth, n_tok,
                    x_ref, wqvk_ref, bqvk_ref,
                    g1_ref, be1_ref,
                    w1_ref, b1_ref, w2_ref, b2_ref,
                    g2_ref, be2_ref,
                    o_ref):
    """One batch-tile of the fused encoder; all `depth` layers run in-kernel.

    x_ref / o_ref are 2-D (Bt*N, D) slabs.  All per-layer parameters are
    stacked on a leading depth axis and resident in VMEM for the whole call;
    `param_ref[l]` with static `l` is a zero-cost static slice.
    """
    R, D = o_ref.shape
    N = n_tok
    Bt = R // N
    H = head_num
    dh = D // H
    inv_scale = 1.0 / math.sqrt(dh)

    x = x_ref[...].astype(jnp.float32)                       # (R, D)

    # Depth loop fully unrolled (depth is a static Python int).
    for l in range(depth):
        # ---- multi-head self-attention (full / non-causal) ----
        qvk = jnp.dot(x, wqvk_ref[l],
                      preferred_element_type=jnp.float32) + bqvk_ref[l]  # (R, 3D)
        qvk3 = qvk.reshape(Bt, N, 3 * D)

        # to_eachhead chunk order: chunk0 -> q, chunk1 -> v, chunk2 -> k;
        # inside each chunk the columns are already head-major (dh-wide groups).
        # Pack heads onto a leading (Bt*H) batch axis so attention is two
        # head-batched 3-D einsums instead of a per-head loop of tiny matmuls.
        def split_heads(chunk):
            parts = [qvk3[:, :, chunk * D + h * dh: chunk * D + (h + 1) * dh]
                     for h in range(H)]
            return jnp.stack(parts, axis=1).reshape(Bt * H, N, dh)

        q = split_heads(0) * inv_scale      # fold 1/sqrt(dh) into q (N*dh elems)
        v = split_heads(1)
        k = split_heads(2)

        s = jnp.einsum('bnd,bmd->bnm', q, k, preferred_element_type=jnp.float32)
        s = s - jnp.max(s, axis=-1, keepdims=True)
        p = jnp.exp(s)
        denom = jnp.sum(p, axis=-1, keepdims=True)
        attn = jnp.einsum('bnm,bmd->bnd', p, v, preferred_element_type=jnp.float32)
        attn = attn / denom                 # exact divide (numerical parity)

        attn4 = attn.reshape(Bt, H, N, dh)
        attn_out = jnp.concatenate([attn4[:, h] for h in range(H)], axis=-1)
        attn_out = attn_out.reshape(R, D)   # concat_head

        # TODO(synk): dropout omitted (eval-mode identity; training dropout is random)
        out = attn_out + x
        # LayerNorm 1 (eps = 1e-5, nn.LayerNorm default)
        mu = jnp.mean(out, axis=-1, keepdims=True)
        var = jnp.mean((out - mu) ** 2, axis=-1, keepdims=True)
        out = (out - mu) * jax.lax.rsqrt(var + 1e-5) * g1_ref[l] + be1_ref[l]

        # ---- feed-forward ----
        res = out
        hid = jnp.dot(out, w1_ref[l], preferred_element_type=jnp.float32) + b1_ref[l]
        hid = jnp.maximum(hid, 0.0)
        out = jnp.dot(hid, w2_ref[l], preferred_element_type=jnp.float32) + b2_ref[l]
        out = out + res
        # LayerNorm 2
        mu = jnp.mean(out, axis=-1, keepdims=True)
        var = jnp.mean((out - mu) ** 2, axis=-1, keepdims=True)
        x = (out - mu) * jax.lax.rsqrt(var + 1e-5) * g2_ref[l] + be2_ref[l]

    o_ref[...] = x.astype(o_ref.dtype)


def encoder_forward(x, params, head_num, *, batch_tile=None):
    """Runs the whole (depth-layer) encoder in a single pallas_call."""
    B, N, D = x.shape
    L = params["wqvk"].shape[0]
    Hff = params["w1"].shape[2]
    dh = D // head_num
    Bt = B if batch_tile is None else batch_tile
    assert B % Bt == 0, "batch_tile must divide the batch"

    # Flatten to a 2-D (B*N, D) slab in the wrapper: sublane-aligned rows,
    # no in-kernel reshape of the activation block across the (8,128) tile.
    x2 = x.reshape(B * N, D)

    def full_spec(arr):
        # Whole stacked parameter array as one VMEM-resident block.
        nd = arr.ndim
        return pl.BlockSpec(arr.shape, lambda b, _nd=nd: (0,) * _nd)

    act_spec = pl.BlockSpec((Bt * N, D), lambda b: (b, 0))

    # Advisory cost estimate for XLA's scheduler.
    R = B * N
    flops_layer = (2 * R * D * (3 * D)                       # QKV projection
                   + 2 * (2 * B * head_num * N * N * dh)     # QK^T and PV
                   + 2 * (2 * R * D * Hff))                  # FFN (both linears)
    param_bytes = sum(int(params[k].size) * 4 for k in PARAM_ORDER)
    ce = pl.CostEstimate(
        flops=L * flops_layer,
        transcendentals=L * B * head_num * N * N,            # softmax exp
        bytes_accessed=2 * int(x.size) * 4 + param_bytes,
    )

    out2 = pl.pallas_call(
        partial(_encoder_kernel, head_num, L, N),
        out_shape=jax.ShapeDtypeStruct((B * N, D), x.dtype),
        grid=(B // Bt,),
        in_specs=[act_spec] + [full_spec(params[k]) for k in PARAM_ORDER],
        out_specs=act_spec,
        compiler_params=pltpu.CompilerParams(
            # Batch tiles are fully independent -> "parallel" (megacore on v7x
            # when batch_tile < B; a no-op size-1 axis at the default here).
            dimension_semantics=("parallel",),
        ),
        cost_estimate=ce,
    )(x2, *[params[k] for k in PARAM_ORDER])

    return out2.reshape(B, N, D)


def init_params(key, depth, dim, ff_hidnum):
    """PyTorch-style init; all per-layer params stacked on a leading depth axis."""
    def one_layer(k):
        ks = jax.random.split(k, 6)
        s = lambda fan_in: 1.0 / math.sqrt(fan_in)
        return {
            "wqvk": jax.random.uniform(ks[0], (dim, 3 * dim), jnp.float32, -s(dim), s(dim)),
            "bqvk": jax.random.uniform(ks[1], (1, 3 * dim), jnp.float32, -s(dim), s(dim)),
            "ln1_g": jnp.ones((1, dim), jnp.float32),
            "ln1_b": jnp.zeros((1, dim), jnp.float32),
            "w1": jax.random.uniform(ks[2], (dim, ff_hidnum), jnp.float32, -s(dim), s(dim)),
            "b1": jax.random.uniform(ks[3], (1, ff_hidnum), jnp.float32, -s(dim), s(dim)),
            "w2": jax.random.uniform(ks[4], (ff_hidnum, dim), jnp.float32, -s(ff_hidnum), s(ff_hidnum)),
            "b2": jax.random.uniform(ks[5], (1, dim), jnp.float32, -s(ff_hidnum), s(ff_hidnum)),
            "ln2_g": jnp.ones((1, dim), jnp.float32),
            "ln2_b": jnp.zeros((1, dim), jnp.float32),
        }
    per_layer = [one_layer(k) for k in jax.random.split(key, depth)]
    return {name: jnp.stack([p[name] for p in per_layer], axis=0)
            for name in per_layer[0]}


def encoder_reference(x, params, head_num):
    """Pure-JAX reference matching the PyTorch module (eval mode)."""
    L = params["wqvk"].shape[0]

    def layer_norm(y, g, b):
        mu = jnp.mean(y, axis=-1, keepdims=True)
        var = jnp.mean((y - mu) ** 2, axis=-1, keepdims=True)
        return (y - mu) * jax.lax.rsqrt(var + 1e-5) * g + b

    for l in range(L):
        B, N, D = x.shape
        dh = D // head_num
        qvk = jnp.einsum('bnd,de->bne', x, params["wqvk"][l]) + params["bqvk"][l]
        q, v, k = jnp.split(qvk, 3, axis=-1)            # chunk order: q, v, k
        to_heads = lambda t: t.reshape(B, N, head_num, dh).transpose(0, 2, 1, 3)
        q, v, k = to_heads(q), to_heads(v), to_heads(k)
        s = jnp.einsum('bhnd,bhmd->bhnm', q, k) / math.sqrt(dh)
        p = jax.nn.softmax(s, axis=-1)
        o = jnp.einsum('bhnm,bhmd->bhnd', p, v)
        o = o.transpose(0, 2, 1, 3).reshape(B, N, D)    # concat_head
        out = o + x
        out = layer_norm(out, params["ln1_g"][l], params["ln1_b"][l])
        res = out
        h = jax.nn.relu(jnp.einsum('bnd,dh->bnh', out, params["w1"][l]) + params["b1"][l])
        out = jnp.einsum('bnh,hd->bnd', h, params["w2"][l]) + params["b2"][l] + res
        x = layer_norm(out, params["ln2_g"][l], params["ln2_b"][l])
    return x


if __name__ == "__main__":
    # Encoder(depth=2, dim=32, head_num=4, attn_type='full', ff_hidnum=64), eval mode.
    depth, dim, head_num, ff_hidnum = 2, 32, 4, 64
    B, N = 2, 8

    root = jax.random.PRNGKey(0)
    x_key, p_key = jax.random.split(root)
    x = jax.random.normal(x_key, (B, N, dim), dtype=jnp.float32)
    params = init_params(p_key, depth, dim, ff_hidnum)

    out = encoder_forward(x, params, head_num)
    out = jax.block_until_ready(out)
    assert out.shape == (B, N, dim) and out.dtype == jnp.float32

    ref = jax.block_until_ready(encoder_reference(x, params, head_num))
    max_err = float(jnp.max(jnp.abs(out - ref)))
    # Exact-f32 kernel: tight tolerance so layout/precision regressions are caught.
    assert jnp.allclose(out, ref, atol=1e-4, rtol=1e-4), f"max abs err {max_err}"

    print("KERNEL_OK")
</pallas_src>

<mosaic_0001>
module attributes {stable_mosaic.version = 11 : i64} {
  func.func @_encoder_kernel(%arg0: i32, %arg1: memref<16x32xf32, #tpu.memory_space<vmem>>, %arg2: memref<2x32x96xf32, #tpu.memory_space<vmem>>, %arg3: memref<2x1x96xf32, #tpu.memory_space<vmem>>, %arg4: memref<2x1x32xf32, #tpu.memory_space<vmem>>, %arg5: memref<2x1x32xf32, #tpu.memory_space<vmem>>, %arg6: memref<2x32x64xf32, #tpu.memory_space<vmem>>, %arg7: memref<2x1x64xf32, #tpu.memory_space<vmem>>, %arg8: memref<2x64x32xf32, #tpu.memory_space<vmem>>, %arg9: memref<2x1x32xf32, #tpu.memory_space<vmem>>, %arg10: memref<2x1x32xf32, #tpu.memory_space<vmem>>, %arg11: memref<2x1x32xf32, #tpu.memory_space<vmem>>, %arg12: memref<16x32xf32, #tpu.memory_space<vmem>>) attributes {dimension_semantics = [#tpu.dimension_semantics<parallel>], iteration_bounds = array<i64: 1>, scalar_prefetch = 0 : i64, scratch_operands = 0 : i64, tpu.core_type = #tpu.core_type<tc>, window_params = [{transform_indices = @transform_0, window_bounds = array<i64: 16, 32>}, {pipeline_mode = #tpu.pipeline_mode<synchronous>, transform_indices = @transform_1, window_bounds = array<i64: 2, 32, 96>}, {pipeline_mode = #tpu.pipeline_mode<synchronous>, transform_indices = @transform_2, window_bounds = array<i64: 2, 1, 96>}, {pipeline_mode = #tpu.pipeline_mode<synchronous>, transform_indices = @transform_3, window_bounds = array<i64: 2, 1, 32>}, {pipeline_mode = #tpu.pipeline_mode<synchronous>, transform_indices = @transform_4, window_bounds = array<i64: 2, 1, 32>}, {pipeline_mode = #tpu.pipeline_mode<synchronous>, transform_indices = @transform_5, window_bounds = array<i64: 2, 32, 64>}, {pipeline_mode = #tpu.pipeline_mode<synchronous>, transform_indices = @transform_6, window_bounds = array<i64: 2, 1, 64>}, {pipeline_mode = #tpu.pipeline_mode<synchronous>, transform_indices = @transform_7, window_bounds = array<i64: 2, 64, 32>}, {pipeline_mode = #tpu.pipeline_mode<synchronous>, transform_indices = @transform_8, window_bounds = array<i64: 2, 1, 32>}, {pipeline_mode = #tpu.pipeline_mode<synchronous>, transform_indices = @transform_9, window_bounds = array<i64: 2, 1, 32>}, {pipeline_mode = #tpu.pipeline_mode<synchronous>, transform_indices = @transform_10, window_bounds = array<i64: 2, 1, 32>}, {transform_indices = @transform_11, window_bounds = array<i64: 16, 32>}]} {
    %c0 = arith.constant 0 : index
    %c0_0 = arith.constant 0 : index
    %0 = vector.load %arg1[%c0, %c0_0] : memref<16x32xf32, #tpu.memory_space<vmem>>, vector<16x32xf32>
    %c0_1 = arith.constant 0 : index
    %c0_2 = arith.constant 0 : index
    %c0_3 = arith.constant 0 : index
    %1 = vector.load %arg2[%c0_1, %c0_2, %c0_3] : memref<2x32x96xf32, #tpu.memory_space<vmem>>, vector<1x32x96xf32>
    %2 = vector.shape_cast %1 : vector<1x32x96xf32> to vector<32x96xf32>
    %cst = arith.constant dense<0.000000e+00> : vector<16x96xf32>
    %3 = tpu.matmul %0, %2, %cst {dimension_numbers = #tpu.dot_dimension_numbers<[1], [0], [0], [1], [0, 0, 1, 1], [], []>} : vector<16x32xf32>, vector<32x96xf32>, vector<16x96xf32> -> vector<16x96xf32>
    %c0_4 = arith.constant 0 : index
    %c0_5 = arith.constant 0 : index
    %c0_6 = arith.constant 0 : index
    %4 = vector.load %arg3[%c0_4, %c0_5, %c0_6] : memref<2x1x96xf32, #tpu.memory_space<vmem>>, vector<1x1x96xf32>
    %5 = vector.shape_cast %4 : vector<1x1x96xf32> to vector<1x96xf32>
    %6 = vector.broadcast %5 : vector<1x96xf32> to vector<16x96xf32>
    %7 = arith.addf %3, %6 : vector<16x96xf32>
    %8 = vector.shape_cast %7 : vector<16x96xf32> to vector<2x8x96xf32>
    %9 = vector.extract_strided_slice %8 {offsets = [0, 0, 0], sizes = [2, 8, 8], strides = [1, 1, 1]} : vector<2x8x96xf32> to vector<2x8x8xf32>
    %10 = vector.extract_strided_slice %8 {offsets = [0, 0, 8], sizes = [2, 8, 8], strides = [1, 1, 1]} : vector<2x8x96xf32> to vector<2x8x8xf32>
    %11 = vector.extract_strided_slice %8 {offsets = [0, 0, 16], sizes = [2, 8, 8], strides = [1, 1, 1]} : vector<2x8x96xf32> to vector<2x8x8xf32>
    %12 = vector.extract_strided_slice %8 {offsets = [0, 0, 24], sizes = [2, 8, 8], strides = [1, 1, 1]} : vector<2x8x96xf32> to vector<2x8x8xf32>
    %13 = vector.shape_cast %9 : vector<2x8x8xf32> to vector<2x1x8x8xf32>
    %14 = vector.shape_cast %10 : vector<2x8x8xf32> to vector<2x1x8x8xf32>
    %15 = vector.shape_cast %11 : vector<2x8x8xf32> to vector<2x1x8x8xf32>
    %16 = vector.shape_cast %12 : vector<2x8x8xf32> to vector<2x1x8x8xf32>
    %17 = tpu.concatenate %13, %14, %15, %16 in 1 : vector<2x1x8x8xf32>, vector<2x1x8x8xf32>, vector<2x1x8x8xf32>, vector<2x1x8x8xf32> -> vector<2x4x8x8xf32>
    %18 = vector.shape_cast %17 : vector<2x4x8x8xf32> to vector<8x8x8xf32>
    %cst_7 = arith.constant 0.353553385 : f32
    %19 = vector.broadcast %cst_7 : f32 to vector<8x8x8xf32>
    %20 = arith.mulf %18, %19 : vector<8x8x8xf32>
    %21 = vector.extract_strided_slice %8 {offsets = [0, 0, 32], sizes = [2, 8, 8], strides = [1, 1, 1]} : vector<2x8x96xf32> to vector<2x8x8xf32>
    %22 = vector.extract_strided_slice %8 {offsets = [0, 0, 40], sizes = [2, 8, 8], strides = [1, 1, 1]} : vector<2x8x96xf32> to vector<2x8x8xf32>
    %23 = vector.extract_strided_slice %8 {offsets = [0, 0, 48], sizes = [2, 8, 8], strides = [1, 1, 1]} : vector<2x8x96xf32> to vector<2x8x8xf32>
    %24 = vector.extract_strided_slice %8 {offsets = [0, 0, 56], sizes = [2, 8, 8], strides = [1, 1, 1]} : vector<2x8x96xf32> to vector<2x8x8xf32>
    %25 = vector.shape_cast %21 : vector<2x8x8xf32> to vector<2x1x8x8xf32>
    %26 = vector.shape_cast %22 : vector<2x8x8xf32> to vector<2x1x8x8xf32>
    %27 = vector.shape_cast %23 : vector<2x8x8xf32> to vector<2x1x8x8xf32>
    %28 = vector.shape_cast %24 : vector<2x8x8xf32> to vector<2x1x8x8xf32>
    %29 = tpu.concatenate %25, %26, %27, %28 in 1 : vector<2x1x8x8xf32>, vector<2x1x8x8xf32>, vector<2x1x8x8xf32>, vector<2x1x8x8xf32> -> vector<2x4x8x8xf32>
    %30 = vector.shape_cast %29 : vector<2x4x8x8xf32> to vector<8x8x8xf32>
    %31 = vector.extract_strided_slice %8 {offsets = [0, 0, 64], sizes = [2, 8, 8], strides = [1, 1, 1]} : vector<2x8x96xf32> to vector<2x8x8xf32>
    %32 = vector.extract_strided_slice %8 {offsets = [0, 0, 72], sizes = [2, 8, 8], strides = [1, 1, 1]} : vector<2x8x96xf32> to vector<2x8x8xf32>
    %33 = vector.extract_strided_slice %8 {offsets = [0, 0, 80], sizes = [2, 8, 8], strides = [1, 1, 1]} : vector<2x8x96xf32> to vector<2x8x8xf32>
    %34 = vector.extract_strided_slice %8 {offsets = [0, 0, 88], sizes = [2, 8, 8], strides = [1, 1, 1]} : vector<2x8x96xf32> to vector<2x8x8xf32>
    %35 = vector.shape_cast %31 : vector<2x8x8xf32> to vector<2x1x8x8xf32>
    %36 = vector.shape_cast %32 : vector<2x8x8xf32> to vector<2x1x8x8xf32>
    %37 = vector.shape_cast %33 : vector<2x8x8xf32> to vector<2x1x8x8xf32>
    %38 = vector.shape_cast %34 : vector<2x8x8xf32> to vector<2x1x8x8xf32>
    %39 = tpu.concatenate %35, %36, %37, %38 in 1 : vector<2x1x8x8xf32>, vector<2x1x8x8xf32>, vector<2x1x8x8xf32>, vector<2x1x8x8xf32> -> vector<2x4x8x8xf32>
    %40 = vector.shape_cast %39 : vector<2x4x8x8xf32> to vector<8x8x8xf32>
    "tpu.trace_start"() <{level = 10 : i32, message = "bnd,bmd->bnm"}> : () -> ()
    %cst_8 = arith.constant dense<0.000000e+00> : vector<8x8x8xf32>
    %41 = tpu.matmul %20, %40, %cst_8 {dimension_numbers = #tpu.dot_dimension_numbers<[2], [2], [1], [1], [0, 0, 0, 1, 1, 1], [0], [0]>} : vector<8x8x8xf32>, vector<8x8x8xf32>, vector<8x8x8xf32> -> vector<8x8x8xf32>
    "tpu.trace_stop"() : () -> ()
    %cst_9 = arith.constant dense<0xFF800000> : vector<8x8xf32>
    %42 = vector.multi_reduction <maximumf>, %41, %cst_9 [2] : vector<8x8x8xf32> to vector<8x8xf32>
    %43 = vector.shape_cast %42 : vector<8x8xf32> to vector<8x8x1xf32>
    %44 = vector.broadcast %43 : vector<8x8x1xf32> to vector<8x8x8xf32>
    %45 = arith.subf %41, %44 : vector<8x8x8xf32>
    %46 = math.exp %45 : vector<8x8x8xf32>
    %cst_10 = arith.constant dense<0.000000e+00> : vector<8x8xf32>
    %47 = vector.multi_reduction <add>, %46, %cst_10 [2] : vector<8x8x8xf32> to vector<8x8xf32>
    %48 = vector.shape_cast %47 : vector<8x8xf32> to vector<8x8x1xf32>
    "tpu.trace_start"() <{level = 10 : i32, message = "bnm,bmd->bnd"}> : () -> ()
    %cst_11 = arith.constant dense<0.000000e+00> : vector<8x8x8xf32>
    %49 = tpu.matmul %46, %30, %cst_11 {dimension_numbers = #tpu.dot_dimension_numbers<[2], [1], [1], [2], [0, 0, 0, 1, 1, 2], [0], [0]>} : vector<8x8x8xf32>, vector<8x8x8xf32>, vector<8x8x8xf32> -> vector<8x8x8xf32>
    "tpu.trace_stop"() : () -> ()
    %50 = vector.broadcast %48 : vector<8x8x1xf32> to vector<8x8x8xf32>
    %51 = arith.divf %49, %50 : vector<8x8x8xf32>
    %52 = vector.shape_cast %51 : vector<8x8x8xf32> to vector<2x4x8x8xf32>
    %53 = vector.extract_strided_slice %52 {offsets = [0, 0, 0, 0], sizes = [2, 1, 8, 8], strides = [1, 1, 1, 1]} : vector<2x4x8x8xf32> to vector<2x1x8x8xf32>
    %54 = vector.shape_cast %53 : vector<2x1x8x8xf32> to vector<2x8x8xf32>
    %55 = vector.extract_strided_slice %52 {offsets = [0, 1, 0, 0], sizes = [2, 1, 8, 8], strides = [1, 1, 1, 1]} : vector<2x4x8x8xf32> to vector<2x1x8x8xf32>
    %56 = vector.shape_cast %55 : vector<2x1x8x8xf32> to vector<2x8x8xf32>
    %57 = vector.extract_strided_slice %52 {offsets = [0, 2, 0, 0], sizes = [2, 1, 8, 8], strides = [1, 1, 1, 1]} : vector<2x4x8x8xf32> to vector<2x1x8x8xf32>
    %58 = vector.shape_cast %57 : vector<2x1x8x8xf32> to vector<2x8x8xf32>
    %59 = vector.extract_strided_slice %52 {offsets = [0, 3, 0, 0], sizes = [2, 1, 8, 8], strides = [1, 1, 1, 1]} : vector<2x4x8x8xf32> to vector<2x1x8x8xf32>
    %60 = vector.shape_cast %59 : vector<2x1x8x8xf32> to vector<2x8x8xf32>
    %61 = tpu.concatenate %54, %56, %58, %60 in 2 : vector<2x8x8xf32>, vector<2x8x8xf32>, vector<2x8x8xf32>, vector<2x8x8xf32> -> vector<2x8x32xf32>
    %62 = vector.shape_cast %61 : vector<2x8x32xf32> to vector<16x32xf32>
    %63 = arith.addf %62, %0 : vector<16x32xf32>
    %cst_12 = arith.constant dense<0.000000e+00> : vector<16xf32>
    %64 = vector.multi_reduction <add>, %63, %cst_12 [1] : vector<16x32xf32> to vector<16xf32>
    %65 = vector.shape_cast %64 : vector<16xf32> to vector<16x1xf32>
    %cst_13 = arith.constant 3.200000e+01 : f32
    %66 = vector.broadcast %cst_13 : f32 to vector<16x1xf32>
    %67 = arith.divf %65, %66 : vector<16x1xf32>
    %68 = vector.broadcast %67 : vector<16x1xf32> to vector<16x32xf32>
    %69 = arith.subf %63, %68 : vector<16x32xf32>
    %70 = arith.mulf %69, %69 : vector<16x32xf32>
    %cst_14 = arith.constant dense<0.000000e+00> : vector<16xf32>
    %71 = vector.multi_reduction <add>, %70, %cst_14 [1] : vector<16x32xf32> to vector<16xf32>
    %72 = vector.shape_cast %71 : vector<16xf32> to vector<16x1xf32>
    %cst_15 = arith.constant 3.200000e+01 : f32
    %73 = vector.broadcast %cst_15 : f32 to vector<16x1xf32>
    %74 = arith.divf %72, %73 : vector<16x1xf32>
    %75 = vector.broadcast %67 : vector<16x1xf32> to vector<16x32xf32>
    %76 = arith.subf %63, %75 : vector<16x32xf32>
    %cst_16 = arith.constant 9.99999974E-6 : f32
    %77 = vector.broadcast %cst_16 : f32 to vector<16x1xf32>
    %78 = arith.addf %74, %77 : vector<16x1xf32>
    %79 = math.rsqrt %78 : vector<16x1xf32>
    %80 = vector.broadcast %79 : vector<16x1xf32> to vector<16x32xf32>
    %81 = arith.mulf %76, %80 : vector<16x32xf32>
    %c0_17 = arith.constant 0 : index
    %c0_18 = arith.constant 0 : index
    %c0_19 = arith.constant 0 : index
    %82 = vector.load %arg4[%c0_17, %c0_18, %c0_19] : memref<2x1x32xf32, #tpu.memory_space<vmem>>, vector<1x1x32xf32>
    %83 = vector.shape_cast %82 : vector<1x1x32xf32> to vector<1x32xf32>
    %84 = vector.broadcast %83 : vector<1x32xf32> to vector<16x32xf32>
    %85 = arith.mulf %81, %84 : vector<16x32xf32>
    %c0_20 = arith.constant 0 : index
    %c0_21 = arith.constant 0 : index
    %c0_22 = arith.constant 0 : index
    %86 = vector.load %arg5[%c0_20, %c0_21, %c0_22] : memref<2x1x32xf32, #tpu.memory_space<vmem>>, vector<1x1x32xf32>
    %87 = vector.shape_cast %86 : vector<1x1x32xf32> to vector<1x32xf32>
    %88 = vector.broadcast %87 : vector<1x32xf32> to vector<16x32xf32>
    %89 = arith.addf %85, %88 : vector<16x32xf32>
    %c0_23 = arith.constant 0 : index
    %c0_24 = arith.constant 0 : index
    %c0_25 = arith.constant 0 : index
    %90 = vector.load %arg6[%c0_23, %c0_24, %c0_25] : memref<2x32x64xf32, #tpu.memory_space<vmem>>, vector<1x32x64xf32>
    %91 = vector.shape_cast %90 : vector<1x32x64xf32> to vector<32x64xf32>
    %cst_26 = arith.constant dense<0.000000e+00> : vector<16x64xf32>
    %92 = tpu.matmul %89, %91, %cst_26 {dimension_numbers = #tpu.dot_dimension_numbers<[1], [0], [0], [1], [0, 0, 1, 1], [], []>} : vector<16x32xf32>, vector<32x64xf32>, vector<16x64xf32> -> vector<16x64xf32>
    %c0_27 = arith.constant 0 : index
    %c0_28 = arith.constant 0 : index
    %c0_29 = arith.constant 0 : index
    %93 = vector.load %arg7[%c0_27, %c0_28, %c0_29] : memref<2x1x64xf32, #tpu.memory_space<vmem>>, vector<1x1x64xf32>
    %94 = vector.shape_cast %93 : vector<1x1x64xf32> to vector<1x64xf32>
    %95 = vector.broadcast %94 : vector<1x64xf32> to vector<16x64xf32>
    %96 = arith.addf %92, %95 : vector<16x64xf32>
    %cst_30 = arith.constant 0.000000e+00 : f32
    %97 = vector.broadcast %cst_30 : f32 to vector<16x64xf32>
    %98 = arith.maximumf %96, %97 : vector<16x64xf32>
    %c0_31 = arith.constant 0 : index
    %c0_32 = arith.constant 0 : index
    %c0_33 = arith.constant 0 : index
    %99 = vector.load %arg8[%c0_31, %c0_32, %c0_33] : memref<2x64x32xf32, #tpu.memory_space<vmem>>, vector<1x64x32xf32>
    %100 = vector.shape_cast %99 : vector<1x64x32xf32> to vector<64x32xf32>
    %cst_34 = arith.constant dense<0.000000e+00> : vector<16x32xf32>
    %101 = tpu.matmul %98, %100, %cst_34 {dimension_numbers = #tpu.dot_dimension_numbers<[1], [0], [0], [1], [0, 0, 1, 1], [], []>} : vector<16x64xf32>, vector<64x32xf32>, vector<16x32xf32> -> vector<16x32xf32>
    %c0_35 = arith.constant 0 : index
    %c0_36 = arith.constant 0 : index
    %c0_37 = arith.constant 0 : index
    %102 = vector.load %arg9[%c0_35, %c0_36, %c0_37] : memref<2x1x32xf32, #tpu.memory_space<vmem>>, vector<1x1x32xf32>
    %103 = vector.shape_cast %102 : vector<1x1x32xf32> to vector<1x32xf32>
    %104 = vector.broadcast %103 : vector<1x32xf32> to vector<16x32xf32>
    %105 = arith.addf %101, %104 : vector<16x32xf32>
    %106 = arith.addf %105, %89 : vector<16x32xf32>
    %cst_38 = arith.constant dense<0.000000e+00> : vector<16xf32>
    %107 = vector.multi_reduction <add>, %106, %cst_38 [1] : vector<16x32xf32> to vector<16xf32>
    %108 = vector.shape_cast %107 : vector<16xf32> to vector<16x1xf32>
    %cst_39 = arith.constant 3.200000e+01 : f32
    %109 = vector.broadcast %cst_39 : f32 to vector<16x1xf32>
    %110 = arith.divf %108, %109 : vector<16x1xf32>
    %111 = vector.broadcast %110 : vector<16x1xf32> to vector<16x32xf32>
    %112 = arith.subf %106, %111 : vector<16x32xf32>
    %113 = arith.mulf %112, %112 : vector<16x32xf32>
    %cst_40 = arith.constant dense<0.000000e+00> : vector<16xf32>
    %114 = vector.multi_reduction <add>, %113, %cst_40 [1] : vector<16x32xf32> to vector<16xf32>
    %115 = vector.shape_cast %114 : vector<16xf32> to vector<16x1xf32>
    %cst_41 = arith.constant 3.200000e+01 : f32
    %116 = vector.broadcast %cst_41 : f32 to vector<16x1xf32>
    %117 = arith.divf %115, %116 : vector<16x1xf32>
    %118 = vector.broadcast %110 : vector<16x1xf32> to vector<16x32xf32>
    %119 = arith.subf %106, %118 : vector<16x32xf32>
    %cst_42 = arith.constant 9.99999974E-6 : f32
    %120 = vector.broadcast %cst_42 : f32 to vector<16x1xf32>
    %121 = arith.addf %117, %120 : vector<16x1xf32>
    %122 = math.rsqrt %121 : vector<16x1xf32>
    %123 = vector.broadcast %122 : vector<16x1xf32> to vector<16x32xf32>
    %124 = arith.mulf %119, %123 : vector<16x32xf32>
    %c0_43 = arith.constant 0 : index
    %c0_44 = arith.constant 0 : index
    %c0_45 = arith.constant 0 : index
    %125 = vector.load %arg10[%c0_43, %c0_44, %c0_45] : memref<2x1x32xf32, #tpu.memory_space<vmem>>, vector<1x1x32xf32>
    %126 = vector.shape_cast %125 : vector<1x1x32xf32> to vector<1x32xf32>
    %127 = vector.broadcast %126 : vector<1x32xf32> to vector<16x32xf32>
    %128 = arith.mulf %124, %127 : vector<16x32xf32>
    %c0_46 = arith.constant 0 : index
    %c0_47 = arith.constant 0 : index
    %c0_48 = arith.constant 0 : index
    %129 = vector.load %arg11[%c0_46, %c0_47, %c0_48] : memref<2x1x32xf32, #tpu.memory_space<vmem>>, vector<1x1x32xf32>
    %130 = vector.shape_cast %129 : vector<1x1x32xf32> to vector<1x32xf32>
    %131 = vector.broadcast %130 : vector<1x32xf32> to vector<16x32xf32>
    %132 = arith.addf %128, %131 : vector<16x32xf32>
    %c1 = arith.constant 1 : index
    %c0_49 = arith.constant 0 : index
    %c0_50 = arith.constant 0 : index
    %133 = vector.load %arg2[%c1, %c0_49, %c0_50] : memref<2x32x96xf32, #tpu.memory_space<vmem>>, vector<1x32x96xf32>
    %134 = vector.shape_cast %133 : vector<1x32x96xf32> to vector<32x96xf32>
    %cst_51 = arith.constant dense<0.000000e+00> : vector<16x96xf32>
    %135 = tpu.matmul %132, %134, %cst_51 {dimension_numbers = #tpu.dot_dimension_numbers<[1], [0], [0], [1], [0, 0, 1, 1], [], []>} : vector<16x32xf32>, vector<32x96xf32>, vector<16x96xf32> -> vector<16x96xf32>
    %c1_52 = arith.constant 1 : index
    %c0_53 = arith.constant 0 : index
    %c0_54 = arith.constant 0 : index
    %136 = vector.load %arg3[%c1_52, %c0_53, %c0_54] : memref<2x1x96xf32, #tpu.memory_space<vmem>>, vector<1x1x96xf32>
    %137 = vector.shape_cast %136 : vector<1x1x96xf32> to vector<1x96xf32>
    %138 = vector.broadcast %137 : vector<1x96xf32> to vector<16x96xf32>
    %139 = arith.addf %135, %138 : vector<16x96xf32>
    %140 = vector.shape_cast %139 : vector<16x96xf32> to vector<2x8x96xf32>
    %141 = vector.extract_strided_slice %140 {offsets = [0, 0, 0], sizes = [2, 8, 8], strides = [1, 1, 1]} : vector<2x8x96xf32> to vector<2x8x8xf32>
    %142 = vector.extract_strided_slice %140 {offsets = [0, 0, 8], sizes = [2, 8, 8], strides = [1, 1, 1]} : vector<2x8x96xf32> to vector<2x8x8xf32>
    %143 = vector.extract_strided_slice %140 {offsets = [0, 0, 16], sizes = [2, 8, 8], strides = [1, 1, 1]} : vector<2x8x96xf32> to vector<2x8x8xf32>
    %144 = vector.extract_strided_slice %140 {offsets = [0, 0, 24], sizes = [2, 8, 8], strides = [1, 1, 1]} : vector<2x8x96xf32> to vector<2x8x8xf32>
    %145 = vector.shape_cast %141 : vector<2x8x8xf32> to vector<2x1x8x8xf32>
    %146 = vector.shape_cast %142 : vector<2x8x8xf32> to vector<2x1x8x8xf32>
    %147 = vector.shape_cast %143 : vector<2x8x8xf32> to vector<2x1x8x8xf32>
    %148 = vector.shape_cast %144 : vector<2x8x8xf32> to vector<2x1x8x8xf32>
    %149 = tpu.concatenate %145, %146, %147, %148 in 1 : vector<2x1x8x8xf32>, vector<2x1x8x8xf32>, vector<2x1x8x8xf32>, vector<2x1x8x8xf32> -> vector<2x4x8x8xf32>
    %150 = vector.shape_cast %149 : vector<2x4x8x8xf32> to vector<8x8x8xf32>
    %cst_55 = arith.constant 0.353553385 : f32
    %151 = vector.broadcast %cst_55 : f32 to vector<8x8x8xf32>
    %152 = arith.mulf %150, %151 : vector<8x8x8xf32>
    %153 = vector.extract_strided_slice %140 {offsets = [0, 0, 32], sizes = [2, 8, 8], strides = [1, 1, 1]} : vector<2x8x96xf32> to vector<2x8x8xf32>
    %154 = vector.extract_strided_slice %140 {offsets = [0, 0, 40], sizes = [2, 8, 8], strides = [1, 1, 1]} : vector<2x8x96xf32> to vector<2x8x8xf32>
    %155 = vector.extract_strided_slice %140 {offsets = [0, 0, 48], sizes = [2, 8, 8], strides = [1, 1, 1]} : vector<2x8x96xf32> to vector<2x8x8xf32>
    %156 = vector.extract_strided_slice %140 {offsets = [0, 0, 56], sizes = [2, 8, 8], strides = [1, 1, 1]} : vector<2x8x96xf32> to vector<2x8x8xf32>
    %157 = vector.shape_cast %153 : vector<2x8x8xf32> to vector<2x1x8x8xf32>
    %158 = vector.shape_cast %154 : vector<2x8x8xf32> to vector<2x1x8x8xf32>
    %159 = vector.shape_cast %155 : vector<2x8x8xf32> to vector<2x1x8x8xf32>
    %160 = vector.shape_cast %156 : vector<2x8x8xf32> to vector<2x1x8x8xf32>
    %161 = tpu.concatenate %157, %158, %159, %160 in 1 : vector<2x1x8x8xf32>, vector<2x1x8x8xf32>, vector<2x1x8x8xf32>, vector<2x1x8x8xf32> -> vector<2x4x8x8xf32>
    %162 = vector.shape_cast %161 : vector<2x4x8x8xf32> to vector<8x8x8xf32>
    %163 = vector.extract_strided_slice %140 {offsets = [0, 0, 64], sizes = [2, 8, 8], strides = [1, 1, 1]} : vector<2x8x96xf32> to vector<2x8x8xf32>
    %164 = vector.extract_strided_slice %140 {offsets = [0, 0, 72], sizes = [2, 8, 8], strides = [1, 1, 1]} : vector<2x8x96xf32> to vector<2x8x8xf32>
    %165 = vector.extract_strided_slice %140 {offsets = [0, 0, 80], sizes = [2, 8, 8], strides = [1, 1, 1]} : vector<2x8x96xf32> to vector<2x8x8xf32>
    %166 = vector.extract_strided_slice %140 {offsets = [0, 0, 88], sizes = [2, 8, 8], strides = [1, 1, 1]} : vector<2x8x96xf32> to vector<2x8x8xf32>
    %167 = vector.shape_cast %163 : vector<2x8x8xf32> to vector<2x1x8x8xf32>
    %168 = vector.shape_cast %164 : vector<2x8x8xf32> to vector<2x1x8x8xf32>
    %169 = vector.shape_cast %165 : vector<2x8x8xf32> to vector<2x1x8x8xf32>
    %170 = vector.shape_cast %166 : vector<2x8x8xf32> to vector<2x1x8x8xf32>
    %171 = tpu.concatenate %167, %168, %169, %170 in 1 : vector<2x1x8x8xf32>, vector<2x1x8x8xf32>, vector<2x1x8x8xf32>, vector<2x1x8x8xf32> -> vector<2x4x8x8xf32>
    %172 = vector.shape_cast %171 : vector<2x4x8x8xf32> to vector<8x8x8xf32>
    "tpu.trace_start"() <{level = 10 : i32, message = "bnd,bmd->bnm"}> : () -> ()
    %cst_56 = arith.constant dense<0.000000e+00> : vector<8x8x8xf32>
    %173 = tpu.matmul %152, %172, %cst_56 {dimension_numbers = #tpu.dot_dimension_numbers<[2], [2], [1], [1], [0, 0, 0, 1, 1, 1], [0], [0]>} : vector<8x8x8xf32>, vector<8x8x8xf32>, vector<8x8x8xf32> -> vector<8x8x8xf32>
    "tpu.trace_stop"() : () -> ()
    %cst_57 = arith.constant dense<0xFF800000> : vector<8x8xf32>
    %174 = vector.multi_reduction <maximumf>, %173, %cst_57 [2] : vector<8x8x8xf32> to vector<8x8xf32>
    %175 = vector.shape_cast %174 : vector<8x8xf32> to vector<8x8x1xf32>
    %176 = vector.broadcast %175 : vector<8x8x1xf32> to vector<8x8x8xf32>
    %177 = arith.subf %173, %176 : vector<8x8x8xf32>
    %178 = math.exp %177 : vector<8x8x8xf32>
    %cst_58 = arith.constant dense<0.000000e+00> : vector<8x8xf32>
    %179 = vector.multi_reduction <add>, %178, %cst_58 [2] : vector<8x8x8xf32> to vector<8x8xf32>
    %180 = vector.shape_cast %179 : vector<8x8xf32> to vector<8x8x1xf32>
    "tpu.trace_start"() <{level = 10 : i32, message = "bnm,bmd->bnd"}> : () -> ()
    %cst_59 = arith.constant dense<0.000000e+00> : vector<8x8x8xf32>
    %181 = tpu.matmul %178, %162, %cst_59 {dimension_numbers = #tpu.dot_dimension_numbers<[2], [1], [1], [2], [0, 0, 0, 1, 1, 2], [0], [0]>} : vector<8x8x8xf32>, vector<8x8x8xf32>, vector<8x8x8xf32> -> vector<8x8x8xf32>
    "tpu.trace_stop"() : () -> ()
    %182 = vector.broadcast %180 : vector<8x8x1xf32> to vector<8x8x8xf32>
    %183 = arith.divf %181, %182 : vector<8x8x8xf32>
    %184 = vector.shape_cast %183 : vector<8x8x8xf32> to vector<2x4x8x8xf32>
    %185 = vector.extract_strided_slice %184 {offsets = [0, 0, 0, 0], sizes = [2, 1, 8, 8], strides = [1, 1, 1, 1]} : vector<2x4x8x8xf32> to vector<2x1x8x8xf32>
    %186 = vector.shape_cast %185 : vector<2x1x8x8xf32> to vector<2x8x8xf32>
    %187 = vector.extract_strided_slice %184 {offsets = [0, 1, 0, 0], sizes = [2, 1, 8, 8], strides = [1, 1, 1, 1]} : vector<2x4x8x8xf32> to vector<2x1x8x8xf32>
    %188 = vector.shape_cast %187 : vector<2x1x8x8xf32> to vector<2x8x8xf32>
    %189 = vector.extract_strided_slice %184 {offsets = [0, 2, 0, 0], sizes = [2, 1, 8, 8], strides = [1, 1, 1, 1]} : vector<2x4x8x8xf32> to vector<2x1x8x8xf32>
    %190 = vector.shape_cast %189 : vector<2x1x8x8xf32> to vector<2x8x8xf32>
    %191 = vector.extract_strided_slice %184 {offsets = [0, 3, 0, 0], sizes = [2, 1, 8, 8], strides = [1, 1, 1, 1]} : vector<2x4x8x8xf32> to vector<2x1x8x8xf32>
    %192 = vector.shape_cast %191 : vector<2x1x8x8xf32> to vector<2x8x8xf32>
    %193 = tpu.concatenate %186, %188, %190, %192 in 2 : vector<2x8x8xf32>, vector<2x8x8xf32>, vector<2x8x8xf32>, vector<2x8x8xf32> -> vector<2x8x32xf32>
    %194 = vector.shape_cast %193 : vector<2x8x32xf32> to vector<16x32xf32>
    %195 = arith.addf %194, %132 : vector<16x32xf32>
    %cst_60 = arith.constant dense<0.000000e+00> : vector<16xf32>
    %196 = vector.multi_reduction <add>, %195, %cst_60 [1] : vector<16x32xf32> to vector<16xf32>
    %197 = vector.shape_cast %196 : vector<16xf32> to vector<16x1xf32>
    %cst_61 = arith.constant 3.200000e+01 : f32
    %198 = vector.broadcast %cst_61 : f32 to vector<16x1xf32>
    %199 = arith.divf %197, %198 : vector<16x1xf32>
    %200 = vector.broadcast %199 : vector<16x1xf32> to vector<16x32xf32>
    %201 = arith.subf %195, %200 : vector<16x32xf32>
    %202 = arith.mulf %201, %201 : vector<16x32xf32>
    %cst_62 = arith.constant dense<0.000000e+00> : vector<16xf32>
    %203 = vector.multi_reduction <add>, %202, %cst_62 [1] : vector<16x32xf32> to vector<16xf32>
    %204 = vector.shape_cast %203 : vector<16xf32> to vector<16x1xf32>
    %cst_63 = arith.constant 3.200000e+01 : f32
    %205 = vector.broadcast %cst_63 : f32 to vector<16x1xf32>
    %206 = arith.divf %204, %205 : vector<16x1xf32>
    %207 = vector.broadcast %199 : vector<16x1xf32> to vector<16x32xf32>
    %208 = arith.subf %195, %207 : vector<16x32xf32>
    %cst_64 = arith.constant 9.99999974E-6 : f32
    %209 = vector.broadcast %cst_64 : f32 to vector<16x1xf32>
    %210 = arith.addf %206, %209 : vector<16x1xf32>
    %211 = math.rsqrt %210 : vector<16x1xf32>
    %212 = vector.broadcast %211 : vector<16x1xf32> to vector<16x32xf32>
    %213 = arith.mulf %208, %212 : vector<16x32xf32>
    %c1_65 = arith.constant 1 : index
    %c0_66 = arith.constant 0 : index
    %c0_67 = arith.constant 0 : index
    %214 = vector.load %arg4[%c1_65, %c0_66, %c0_67] : memref<2x1x32xf32, #tpu.memory_space<vmem>>, vector<1x1x32xf32>
    %215 = vector.shape_cast %214 : vector<1x1x32xf32> to vector<1x32xf32>
    %216 = vector.broadcast %215 : vector<1x32xf32> to vector<16x32xf32>
    %217 = arith.mulf %213, %216 : vector<16x32xf32>
    %c1_68 = arith.constant 1 : index
    %c0_69 = arith.constant 0 : index
    %c0_70 = arith.constant 0 : index
    %218 = vector.load %arg5[%c1_68, %c0_69, %c0_70] : memref<2x1x32xf32, #tpu.memory_space<vmem>>, vector<1x1x32xf32>
    %219 = vector.shape_cast %218 : vector<1x1x32xf32> to vector<1x32xf32>
    %220 = vector.broadcast %219 : vector<1x32xf32> to vector<16x32xf32>
    %221 = arith.addf %217, %220 : vector<16x32xf32>
    %c1_71 = arith.constant 1 : index
    %c0_72 = arith.constant 0 : index
    %c0_73 = arith.constant 0 : index
    %222 = vector.load %arg6[%c1_71, %c0_72, %c0_73] : memref<2x32x64xf32, #tpu.memory_space<vmem>>, vector<1x32x64xf32>
    %223 = vector.shape_cast %222 : vector<1x32x64xf32> to vector<32x64xf32>
    %cst_74 = arith.constant dense<0.000000e+00> : vector<16x64xf32>
    %224 = tpu.matmul %221, %223, %cst_74 {dimension_numbers = #tpu.dot_dimension_numbers<[1], [0], [0], [1], [0, 0, 1, 1], [], []>} : vector<16x32xf32>, vector<32x64xf32>, vector<16x64xf32> -> vector<16x64xf32>
    %c1_75 = arith.constant 1 : index
    %c0_76 = arith.constant 0 : index
    %c0_77 = arith.constant 0 : index
    %225 = vector.load %arg7[%c1_75, %c0_76, %c0_77] : memref<2x1x64xf32, #tpu.memory_space<vmem>>, vector<1x1x64xf32>
    %226 = vector.shape_cast %225 : vector<1x1x64xf32> to vector<1x64xf32>
    %227 = vector.broadcast %226 : vector<1x64xf32> to vector<16x64xf32>
    %228 = arith.addf %224, %227 : vector<16x64xf32>
    %cst_78 = arith.constant 0.000000e+00 : f32
    %229 = vector.broadcast %cst_78 : f32 to vector<16x64xf32>
    %230 = arith.maximumf %228, %229 : vector<16x64xf32>
    %c1_79 = arith.constant 1 : index
    %c0_80 = arith.constant 0 : index
    %c0_81 = arith.constant 0 : index
    %231 = vector.load %arg8[%c1_79, %c0_80, %c0_81] : memref<2x64x32xf32, #tpu.memory_space<vmem>>, vector<1x64x32xf32>
    %232 = vector.shape_cast %231 : vector<1x64x32xf32> to vector<64x32xf32>
    %cst_82 = arith.constant dense<0.000000e+00> : vector<16x32xf32>
    %233 = tpu.matmul %230, %232, %cst_82 {dimension_numbers = #tpu.dot_dimension_numbers<[1], [0], [0], [1], [0, 0, 1, 1], [], []>} : vector<16x64xf32>, vector<64x32xf32>, vector<16x32xf32> -> vector<16x32xf32>
    %c1_83 = arith.constant 1 : index
    %c0_84 = arith.constant 0 : index
    %c0_85 = arith.constant 0 : index
    %234 = vector.load %arg9[%c1_83, %c0_84, %c0_85] : memref<2x1x32xf32, #tpu.memory_space<vmem>>, vector<1x1x32xf32>
    %235 = vector.shape_cast %234 : vector<1x1x32xf32> to vector<1x32xf32>
    %236 = vector.broadcast %235 : vector<1x32xf32> to vector<16x32xf32>
    %237 = arith.addf %233, %236 : vector<16x32xf32>
    %238 = arith.addf %237, %221 : vector<16x32xf32>
    %cst_86 = arith.constant dense<0.000000e+00> : vector<16xf32>
    %239 = vector.multi_reduction <add>, %238, %cst_86 [1] : vector<16x32xf32> to vector<16xf32>
    %240 = vector.shape_cast %239 : vector<16xf32> to vector<16x1xf32>
    %cst_87 = arith.constant 3.200000e+01 : f32
    %241 = vector.broadcast %cst_87 : f32 to vector<16x1xf32>
    %242 = arith.divf %240, %241 : vector<16x1xf32>
    %243 = vector.broadcast %242 : vector<16x1xf32> to vector<16x32xf32>
    %244 = arith.subf %238, %243 : vector<16x32xf32>
    %245 = arith.mulf %244, %244 : vector<16x32xf32>
    %cst_88 = arith.constant dense<0.000000e+00> : vector<16xf32>
    %246 = vector.multi_reduction <add>, %245, %cst_88 [1] : vector<16x32xf32> to vector<16xf32>
    %247 = vector.shape_cast %246 : vector<16xf32> to vector<16x1xf32>
    %cst_89 = arith.constant 3.200000e+01 : f32
    %248 = vector.broadcast %cst_89 : f32 to vector<16x1xf32>
    %249 = arith.divf %247, %248 : vector<16x1xf32>
    %250 = vector.broadcast %242 : vector<16x1xf32> to vector<16x32xf32>
    %251 = arith.subf %238, %250 : vector<16x32xf32>
    %cst_90 = arith.constant 9.99999974E-6 : f32
    %252 = vector.broadcast %cst_90 : f32 to vector<16x1xf32>
    %253 = arith.addf %249, %252 : vector<16x1xf32>
    %254 = math.rsqrt %253 : vector<16x1xf32>
    %255 = vector.broadcast %254 : vector<16x1xf32> to vector<16x32xf32>
    %256 = arith.mulf %251, %255 : vector<16x32xf32>
    %c1_91 = arith.constant 1 : index
    %c0_92 = arith.constant 0 : index
    %c0_93 = arith.constant 0 : index
    %257 = vector.load %arg10[%c1_91, %c0_92, %c0_93] : memref<2x1x32xf32, #tpu.memory_space<vmem>>, vector<1x1x32xf32>
    %258 = vector.shape_cast %257 : vector<1x1x32xf32> to vector<1x32xf32>
    %259 = vector.broadcast %258 : vector<1x32xf32> to vector<16x32xf32>
    %260 = arith.mulf %256, %259 : vector<16x32xf32>
    %c1_94 = arith.constant 1 : index
    %c0_95 = arith.constant 0 : index
    %c0_96 = arith.constant 0 : index
    %261 = vector.load %arg11[%c1_94, %c0_95, %c0_96] : memref<2x1x32xf32, #tpu.memory_space<vmem>>, vector<1x1x32xf32>
    %262 = vector.shape_cast %261 : vector<1x1x32xf32> to vector<1x32xf32>
    %263 = vector.broadcast %262 : vector<1x32xf32> to vector<16x32xf32>
    %264 = arith.addf %260, %263 : vector<16x32xf32>
    %c0_97 = arith.constant 0 : index
    %c0_98 = arith.constant 0 : index
    %265 = vector.load %arg12[%c0_97, %c0_98] : memref<16x32xf32, #tpu.memory_space<vmem>>, vector<16x32xf32>
    tpu.vector_store %arg12[%c0_97, %c0_98], %264 {strides = array<i32>} : memref<16x32xf32, #tpu.memory_space<vmem>>, vector<16x32xf32>,
    return
  }
  func.func @transform_0(%arg0: i32) -> (i32, i32) {
    %c0_i32 = arith.constant 0 : i32
    %c0_i32_0 = arith.constant 0 : i32
    return %arg0, %c0_i32 : i32, i32
  }
  func.func @transform_1(%arg0: i32) -> (i32, i32, i32) {
    %c0_i32 = arith.constant 0 : i32
    %c0_i32_0 = arith.constant 0 : i32
    %c0_i32_1 = arith.constant 0 : i32
    %c0_i32_2 = arith.constant 0 : i32
    return %c0_i32, %c0_i32_0, %c0_i32_1 : i32, i32, i32
  }
  func.func @transform_2(%arg0: i32) -> (i32, i32, i32) {
    %c0_i32 = arith.constant 0 : i32
    %c0_i32_0 = arith.constant 0 : i32
    %c0_i32_1 = arith.constant 0 : i32
    %c0_i32_2 = arith.constant 0 : i32
    return %c0_i32, %c0_i32_0, %c0_i32_1 : i32, i32, i32
  }
  func.func @transform_3(%arg0: i32) -> (i32, i32, i32) {
    %c0_i32 = arith.constant 0 : i32
    %c0_i32_0 = arith.constant 0 : i32
    %c0_i32_1 = arith.constant 0 : i32
    %c0_i32_2 = arith.constant 0 : i32
    return %c0_i32, %c0_i32_0, %c0_i32_1 : i32, i32, i32
  }
  func.func @transform_4(%arg0: i32) -> (i32, i32, i32) {
    %c0_i32 = arith.constant 0 : i32
    %c0_i32_0 = arith.constant 0 : i32
    %c0_i32_1 = arith.constant 0 : i32
    %c0_i32_2 = arith.constant 0 : i32
    return %c0_i32, %c0_i32_0, %c0_i32_1 : i32, i32, i32
  }
  func.func @transform_5(%arg0: i32) -> (i32, i32, i32) {
    %c0_i32 = arith.constant 0 : i32
    %c0_i32_0 = arith.constant 0 : i32
    %c0_i32_1 = arith.constant 0 : i32
    %c0_i32_2 = arith.constant 0 : i32
    return %c0_i32, %c0_i32_0, %c0_i32_1 : i32, i32, i32
  }
  func.func @transform_6(%arg0: i32) -> (i32, i32, i32) {
    %c0_i32 = arith.constant 0 : i32
    %c0_i32_0 = arith.constant 0 : i32
    %c0_i32_1 = arith.constant 0 : i32
    %c0_i32_2 = arith.constant 0 : i32
    return %c0_i32, %c0_i32_0, %c0_i32_1 : i32, i32, i32
  }
  func.func @transform_7(%arg0: i32) -> (i32, i32, i32) {
    %c0_i32 = arith.constant 0 : i32
    %c0_i32_0 = arith.constant 0 : i32
    %c0_i32_1 = arith.constant 0 : i32
    %c0_i32_2 = arith.constant 0 : i32
    return %c0_i32, %c0_i32_0, %c0_i32_1 : i32, i32, i32
  }
  func.func @transform_8(%arg0: i32) -> (i32, i32, i32) {
    %c0_i32 = arith.constant 0 : i32
    %c0_i32_0 = arith.constant 0 : i32
    %c0_i32_1 = arith.constant 0 : i32
    %c0_i32_2 = arith.constant 0 : i32
    return %c0_i32, %c0_i32_0, %c0_i32_1 : i32, i32, i32
  }
  func.func @transform_9(%arg0: i32) -> (i32, i32, i32) {
    %c0_i32 = arith.constant 0 : i32
    %c0_i32_0 = arith.constant 0 : i32
    %c0_i32_1 = arith.constant 0 : i32
    %c0_i32_2 = arith.constant 0 : i32
    return %c0_i32, %c0_i32_0, %c0_i32_1 : i32, i32, i32
  }
  func.func @transform_10(%arg0: i32) -> (i32, i32, i32) {
    %c0_i32 = arith.constant 0 : i32
    %c0_i32_0 = arith.constant 0 : i32
    %c0_i32_1 = arith.constant 0 : i32
    %c0_i32_2 = arith.constant 0 : i32
    return %c0_i32, %c0_i32_0, %c0_i32_1 : i32, i32, i32
  }
  func.func @transform_11(%arg0: i32) -> (i32, i32) {
    %c0_i32 = arith.constant 0 : i32
    %c0_i32_0 = arith.constant 0 : i32
    return %arg0, %c0_i32 : i32, i32
  }
}

</mosaic_0001>

<bundles_post_ra>
// kernel: tpu_custom_call.1
= control target key start
LH: loop header
LB: loop body
LE: loop exit
PB: predicated region body
PF: predicated region fallthrough
CT: control target
= control target key end

     0   :  { %vm52_vm0 = vcmask 261120   ;;  %s4743_s0 = inlined_call_operand.vmem [shape: f32[16,32], index: 0, kind: input, shape index: {}]   ;;  %s4744_s1 = inlined_call_operand.vmem [shape: f32[2,32,96], index: 1, kind: input, shape index: {}]   ;;  %s4745_s2 = inlined_call_operand.vmem [shape: f32[2,1,96], index: 2, kind: input, shape index: {}]   ;;  %s4746_s3 = inlined_call_operand.vmem [shape: f32[2,1,32], index: 3, kind: input, shape index: {}]   ;;  %s4747_s4 = inlined_call_operand.vmem [shape: f32[2,1,32], index: 4, kind: input, shape index: {}]   ;;  %s4748_s5 = inlined_call_operand.vmem [shape: f32[2,32,64], index: 5, kind: input, shape index: {}]   ;;  %s4749_s6 = inlined_call_operand.vmem [shape: f32[2,1,64], index: 6, kind: input, shape index: {}]   ;;  %s4750_s7 = inlined_call_operand.vmem [shape: f32[2,64,32], index: 7, kind: input, shape index: {}]   ;;  %s4751_s8 = inlined_call_operand.vmem [shape: f32[2,1,32], index: 8, kind: input, shape index: {}]   ;;  %s4752_s9 = inlined_call_operand.vmem [shape: f32[2,1,32], index: 9, kind: input, shape index: {}]   ;;  %s4753_s10 = inlined_call_operand.vmem [shape: f32[2,1,32], index: 10, kind: input, shape index: {}]   ;;  %s4754_s11 = inlined_call_operand.hbm [shape: f32[16,32], index: 11, kind: output, shape index: {}]  }
   0x1   :  { %v41_v0 = vld [vmem:[%s4744_s1] sm:$0xff]  ;;  %v42_v1 = vld [vmem:[%s4744_s1 + $0x8] sm:$0xff]  ;;  %v43_v2 = vld [vmem:[%s4744_s1 + $0x10] sm:$0xff] }
   0x2   :  { %v4010_v3 = vpack.c.bf16 %v42_v1, %v41_v0  ;;  %v44_v4 = vld [vmem:[%s4744_s1 + $0x18] sm:$0xff]  ;;  %v4277_v5 = vld [vmem:[%s4743_s0] sm:$0xff] }
   0x3   :  { %v4014_v6 = vpack.c.bf16 %v44_v4, %v43_v2  ;;  %3776 = vmatprep.mubr.msk.f32.mxu0 %vm52_vm0, %v4277_v5 }
   0x4   :  { %16 = vsyncpa [#allocation3], 0  ;;  %4011 = vmatprep.subr.bf16.mxu0 %v4010_v3  ;;  %v4284_v7 = vld [vmem:[%s4743_s0 + $0x8] sm:$0xff]  ;;  %v3563_v8 = vld [vmem:[%s4745_s2] ss:$0 sm:$0xff]  ;;  %v4190_v10 = vmov 0.0  }
   0x5   :  { %4013 = vmatpush3.bf16.msra.mxu0 %v4010_v3  ;;  %3784 = vmatprep.subr.mxu1 %v4190_v10  ;;  %s4191_s12 = smov 104   ;;  %s4192_s0 = smov 120   ;;  %vm4193_vm1 = vmmov 0   ;;  %vm164_vm2 = vcmask 64512   ;;  %vm1501_vm3 = vcmask 130048   ;;  %vm1504_vm4 = vcmask 195584  }
   0x6   :  { %4015 = vmatprep.subr.bf16.mxu0 %v4014_v6  ;;  %3786 = vmatprep.mubr.msk.f32.mxu1 %vm4193_vm1, %v4190_v10  ;;  %s4194_s13 = smov 112   ;;  %s4195_s14 = smov 64   ;;  %vm1663_vm5 = vcmask 523264  }
   0x7   :  { %s4196_s15 = smov 96   ;;  %s4197_s16 = smov 8  }
   0x8   :  { %s4198_s17 = smov 16   ;;  %s4199_s18 = smov 24  }
   0x9   :  { %4017 = vmatpush3.bf16.msra.mxu0 %v4014_v6  ;;  %s4200_s29 = smov [#allocation2]  }
   0xa   :  { %3779 = vmatprep.subr.mxu0 %v4190_v10  ;;  %s3552_s30 = sshll.u32 %s4200_s29, 4  ;;  %s3553_s30 = int_to_ptr.vmem [resolvable:$true] %s3552_s30 }
   0xb   :  { %s4166_s19 = scalar_lea.vmem %s3553_s30, 256  ;;  %p4171_p1 = scmp.lt.s32.totalorder %s3553_s30, %s3553_s30 }
   0xc   :  { %3777 = vmatmul.mubr.msk.f32.vlgmr.msra.gmra.mrb[0].mxu0 %vm52_vm0, %v4284_v7  ;;  %p4167_p0 = scmp.ne.s32.totalorder %s3553_s30, %s4166_s19  ;;  %p4172_p2 = scmp.lt.s32.totalorder %s4166_s19, %s4166_s19 }
   0xd   :  { %3781 = vmatprep.mubr.msk.f32.mxu0 %vm4193_vm1, %v4190_v10 }
   0xe   :  { %p4173_p3 = por %p4172_p2, %p4171_p1 }
  0x10   :  { %p4174_p4 = pnand %p4173_p3, %p4167_p0 }
  0xdf   :  { %v3778_v9 = vpop.f32.mrb[0].mxu0 }
  0xe0   :  { %v125_v11 = vpop.f32.mrb[1].mxu0  ;;  %v131_v13 = vadd.f32 %v3778_v9, %v3563_v8 }
  0xe1   :  { %v126_v12 = vadd.f32 %v3563_v8, %v125_v11 }
  0xe2   :  { %v158_v31 = vmul.f32 0.35355338, %v131_v13 }
  0xe3   :  { %148 = vrot.lane.b32.xlu1 %v126_v12, %s4191_s12  ;;  %136 = vrot.lane.b32.xlu0 %v126_v12, %s4192_s0  ;;  %v154_v21 = vmul.f32 0.35355338, %v126_v12 }
  0xe7   :  { %138 = vrot.lane.b32.xlu1 %v131_v13, %s4192_s0  ;;  %142 = vrot.lane.b32.xlu0 %v126_v12, %s4194_s13 }
  0xeb   :  { %150 = vrot.lane.b32.xlu1 %v131_v13, %s4191_s12  ;;  %144 = vrot.lane.b32.xlu0 %v131_v13, %s4194_s13 }
  0xef   :  { %162 = vrot.lane.b32.xlu0 %v126_v12, %s4195_s14 }
 0x155   :  { %v149_v14 = vpop.permute.xlu1 %148  ;;  %v137_v15 = vpop.permute.xlu0 %136 }
 0x156   :  { %240 = vrot.lane.b32.xlu1 %v137_v15, %s4195_s14  ;;  %v155_v23 = vmul.f32 0.35355338, %v137_v15  ;;  %v157_v26 = vmul.f32 0.35355338, %v149_v14 }
 0x159   :  { %v143_v16 = vpop.permute.xlu0 %142  ;;  %v139_v17 = vpop.permute.xlu1 %138 }
 0x15a   :  { %394 = vrot.lane.b32.xlu1 %v149_v14, %s4195_s14  ;;  %317 = vrot.lane.b32.xlu0 %v143_v16, %s4195_s14  ;;  %v156_v27 = vmul.f32 0.35355338, %v143_v16  ;;  %v159_v30 = vmul.f32 0.35355338, %v139_v17 }
 0x15d   :  { %v4307_v18 = vpop.permute.xlu0 %144  ;;  %v4311_v19 = vpop.permute.xlu1 %150 }
 0x15e   :  { %548 = vrot.lane.b32.xlu1 %v139_v17, %s4195_s14  ;;  %471 = vrot.lane.b32.xlu0 %v131_v13, %s4195_s14  ;;  %v161_v34 = vmul.f32 0.35355338, %v4311_v19  ;;  %v160_v35 = vmul.f32 0.35355338, %v4307_v18 }
 0x161   :  { %v163_v20 = vpop.permute.xlu0 %162 }
 0x162   :  { %702 = vrot.lane.b32.xlu1 %v4311_v19, %s4195_s14  ;;  %625 = vrot.lane.b32.xlu0 %v4307_v18, %s4195_s14 }
 0x163   :  { %3780 = vmatpush3.xpose.msk.msra.mxu0 %vm164_vm2, %v163_v20 }
 0x164   :  { %3789 = vmatprep.subr.mxu0 %v4190_v10 }
 0x166   :  { %3782 = vmatmul.mubr.msk.f32.vlgmr.msra.gmra.mrb[2].mxu0 %vm164_vm2, %v154_v21  ;;  %851 = vrot.lane.b32.xlu1 %v126_v12, %s4196_s15 }
 0x167   :  { %1155 = vrot.lane.b32.xlu0 %v131_v13, %s4196_s15  ;;  %3791 = vmatprep.mubr.msk.f32.mxu0 %vm4193_vm1, %v4190_v10 }
 0x16a   :  { %1231 = vrot.lane.b32.xlu1 %v139_v17, %s4196_s15 }
 0x16b   :  { %927 = vrot.lane.b32.xlu0 %v137_v15, %s4196_s15 }
 0x16e   :  { %1003 = vrot.lane.b32.xlu1 %v143_v16, %s4196_s15 }
 0x172   :  { %1079 = vrot.lane.b32.xlu1 %v149_v14, %s4196_s15 }
 0x1c8   :  { %v241_v22 = vpop.permute.xlu1 %240 }
 0x1c9   :  { %3785 = vmatpush3.xpose.msk.msra.mxu1 %vm164_vm2, %v241_v22 }
 0x1ca   :  { %3794 = vmatprep.subr.mxu1 %v4190_v10 }
 0x1cc   :  { %3787 = vmatmul.mubr.msk.f32.vlgmr.msra.gmra.mrb[0].mxu1 %vm164_vm2, %v155_v23  ;;  %v395_v24 = vpop.permute.xlu1 %394  ;;  %v318_v25 = vpop.permute.xlu0 %317 }
 0x1cd   :  { %3790 = vmatpush3.xpose.msk.msra.mxu0 %vm164_vm2, %v318_v25  ;;  %3795 = vmatpush3.xpose.msk.msra.mxu1 %vm164_vm2, %v395_v24 }
 0x1ce   :  { %3796 = vmatprep.mubr.msk.f32.mxu1 %vm4193_vm1, %v4190_v10  ;;  %3804 = vmatprep.subr.mxu1 %v4190_v10 }
 0x1cf   :  { %3799 = vmatprep.subr.mxu0 %v4190_v10 }
 0x1d0   :  { %3797 = vmatmul.mubr.msk.f32.vlgmr.msra.gmra.mrb[2].mxu1 %vm164_vm2, %v157_v26  ;;  %v549_v28 = vpop.permute.xlu1 %548  ;;  %v472_v29 = vpop.permute.xlu0 %471  ;;  %3792 = vmatmul.mubr.msk.f32.vlgmr.msra.gmra.mrb[4].mxu0 %vm164_vm2, %v156_v27 }
 0x1d1   :  { %3800 = vmatpush3.xpose.msk.msra.mxu0 %vm164_vm2, %v472_v29  ;;  %3805 = vmatpush3.xpose.msk.msra.mxu1 %vm164_vm2, %v549_v28 }
 0x1d2   :  { %3801 = vmatprep.mubr.msk.f32.mxu0 %vm4193_vm1, %v4190_v10  ;;  %3806 = vmatprep.mubr.msk.f32.mxu1 %vm4193_vm1, %v4190_v10 }
 0x1d3   :  { %3814 = vmatprep.subr.mxu1 %v4190_v10  ;;  %3809 = vmatprep.subr.mxu0 %v4190_v10 }
 0x1d4   :  { %3807 = vmatmul.mubr.msk.f32.vlgmr.msra.gmra.mrb[4].mxu1 %vm164_vm2, %v159_v30  ;;  %v703_v32 = vpop.permute.xlu1 %702  ;;  %v626_v33 = vpop.permute.xlu0 %625  ;;  %3802 = vmatmul.mubr.msk.f32.vlgmr.msra.gmra.mrb[6].mxu0 %vm164_vm2, %v158_v31 }
 0x1d5   :  { %3810 = vmatpush3.xpose.msk.msra.mxu0 %vm164_vm2, %v626_v33  ;;  %3815 = vmatpush3.xpose.msk.msra.mxu1 %vm164_vm2, %v703_v32 }
 0x1d6   :  { %3811 = vmatprep.mubr.msk.f32.mxu0 %vm4193_vm1, %v4190_v10  ;;  %3816 = vmatprep.mubr.msk.f32.mxu1 %vm4193_vm1, %v4190_v10 }
 0x1d7   :  { %3819 = vmatprep.subr.mxu0 %v4190_v10  ;;  %3824 = vmatprep.subr.mxu1 %v4190_v10 }
 0x1d8   :  { %3817 = vmatmul.mubr.msk.f32.vlgmr.msra.gmra.mrb[6].mxu1 %vm164_vm2, %v161_v34  ;;  %v852_v36 = vpop.permute.xlu1 %851  ;;  %3812 = vmatmul.mubr.msk.f32.vlgmr.msra.gmra.mrb[8].mxu0 %vm164_vm2, %v160_v35 }
 0x1d9   :  { %v4361_v37 = vpop.permute.xlu0 %1155  ;;  %3820 = vmatpush3.msra.mxu0 %v852_v36  ;;  %3821 = vmatprep.mubr.msk.f32.mxu0 %vm4193_vm1, %v4190_v10 }
 0x1da   :  { %3829 = vmatprep.subr.mxu0 %v4190_v10  ;;  %3826 = vmatprep.mubr.msk.f32.mxu1 %vm4193_vm1, %v4190_v10 }
 0x1dc   :  { %v1232_v2 = vpop.permute.xlu1 %1231 }
 0x1dd   :  { %v928_v38 = vpop.permute.xlu0 %927 }
 0x1de   :  { %3825 = vmatpush3.msra.mxu1 %v928_v38 }
 0x1df   :  { %3834 = vmatprep.subr.mxu1 %v4190_v10 }
 0x1e0   :  { %v1004_v4 = vpop.permute.xlu1 %1003 }
 0x1e4   :  { %v1080_v6 = vpop.permute.xlu1 %1079 }
 0x239   :  { %v236_v39 = vpop.f32.mrb[2].mxu0 }
 0x23a   :  { %v3783_v40 = vpop.f32.mrb[3].mxu0  ;;  %v779_v41 = vsel %vm164_vm2, %v236_v39, -inf }
 0x23b   :  { %780 = vmax.xlane.f32.xlu0 %v779_v41 }
 0x29f   :  { %v313_v42 = vpop.f32.mrb[0].mxu1 }
 0x2a0   :  { %v3788_v43 = vpop.f32.mrb[1].mxu1  ;;  %v782_v44 = vsel %vm164_vm2, %v313_v42, -inf }
 0x2a1   :  { %783 = vmax.xlane.f32.xlu1 %v782_v44 }
 0x2a3   :  { %v390_v45 = vpop.f32.mrb[4].mxu0  ;;  %v467_v46 = vpop.f32.mrb[2].mxu1 }
 0x2a4   :  { %v3793_v47 = vpop.f32.mrb[5].mxu0  ;;  %v3798_v48 = vpop.f32.mrb[3].mxu1  ;;  %v785_v49 = vsel %vm164_vm2, %v390_v45, -inf  ;;  %v788_v54 = vsel %vm164_vm2, %v467_v46, -inf }
 0x2a5   :  { %786 = vmax.xlane.f32.xlu0 %v785_v49 }
 0x2a7   :  { %v544_v50 = vpop.f32.mrb[6].mxu0  ;;  %v621_v51 = vpop.f32.mrb[4].mxu1 }
 0x2a8   :  { %v3803_v52 = vpop.f32.mrb[7].mxu0  ;;  %v3808_v53 = vpop.f32.mrb[5].mxu1  ;;  %v791_v55 = vsel %vm164_vm2, %v544_v50, -inf  ;;  %v794_v60 = vsel %vm164_vm2, %v621_v51, -inf }
 0x2a9   :  { %789 = vmax.xlane.f32.xlu0 %v788_v54  ;;  %792 = vmax.xlane.f32.xlu1 %v791_v55 }
 0x2ab   :  { %v698_v56 = vpop.f32.mrb[8].mxu0  ;;  %v775_v57 = vpop.f32.mrb[6].mxu1 }
 0x2ac   :  { %v3813_v58 = vpop.f32.mrb[9].mxu0  ;;  %v3818_v59 = vpop.f32.mrb[7].mxu1  ;;  %v797_v61 = vsel %vm164_vm2, %v698_v56, -inf  ;;  %v800_v62 = vsel %vm164_vm2, %v775_v57, -inf }
 0x2ad   :  { %795 = vmax.xlane.f32.xlu0 %v794_v60  ;;  %798 = vmax.xlane.f32.xlu1 %v797_v61 }
 0x2b1   :  { %801 = vmax.xlane.f32.xlu0 %v800_v62 }
 0x2be   :  { %1383 = vrot.lane.b32.xlu1 %v4311_v19, %s4196_s15 }
 0x2c7   :  { %1307 = vrot.lane.b32.xlu0 %v4307_v18, %s4196_s15 }
 0x2c8   :  { %v781_v63 = vpop.xlane.xlu0 %780 }
 0x2c9   :  { %v803_v0 = vsub.f32 %v236_v39, %v781_v63 }
 0x2cb   :  { %v811_v1 = vmul.f32 1.442695, %v803_v0 }
 0x2cd   :  { %4086 = vpow2.f32 %v811_v1 }
 0x2d7   :  { %v4381_v3 = vpop.eup %4086 }
 0x2d8   :  { %3822 = vmatmul.mubr.msk.f32.vlgmr.msra.gmra.mrb[10].mxu0 %vm164_vm2, %v4381_v3 }
 0x2d9   :  { %3830 = vmatpush3.msra.mxu0 %v1004_v4  ;;  %3831 = vmatprep.mubr.msk.f32.mxu0 %vm4193_vm1, %v4190_v10 }
 0x2da   :  { %3839 = vmatprep.subr.mxu0 %v4190_v10 }
 0x32e   :  { %v784_v8 = vpop.xlane.xlu1 %783 }
 0x32f   :  { %v804_v9 = vsub.f32 %v313_v42, %v784_v8 }
 0x331   :  { %v813_v11 = vmul.f32 1.442695, %v804_v9 }
 0x332   :  { %v787_v12 = vpop.xlane.xlu0 %786 }
 0x333   :  { %4088 = vpow2.f32 %v813_v11  ;;  %v805_v13 = vsub.f32 %v390_v45, %v787_v12  ;;  %v827_v45 = vsel %vm164_vm2, %v4381_v3, 0.0 }
 0x335   :  { %v815_v14 = vmul.f32 1.442695, %v805_v13 }
 0x336   :  { %v790_v15 = vpop.xlane.xlu0 %789  ;;  %v793_v16 = vpop.xlane.xlu1 %792 }
 0x337   :  { %4090 = vpow2.f32 %v815_v14  ;;  %v806_v17 = vsub.f32 %v467_v46, %v790_v15  ;;  %v807_v18 = vsub.f32 %v544_v50, %v793_v16 }
 0x339   :  { %v817_v19 = vmul.f32 1.442695, %v806_v17  ;;  %v819_v20 = vmul.f32 1.442695, %v807_v18 }
 0x33a   :  { %v796_v21 = vpop.xlane.xlu0 %795  ;;  %v799_v22 = vpop.xlane.xlu1 %798 }
 0x33b   :  { %4092 = vpow2.f32 %v817_v19  ;;  %v808_v23 = vsub.f32 %v621_v51, %v796_v21  ;;  %v809_v24 = vsub.f32 %v698_v56, %v799_v22 }
 0x33c   :  { %4094 = vpow2.f32 %v819_v20 }
 0x33d   :  { %v4089_v25 = vpop.eup %4088  ;;  %v821_v26 = vmul.f32 1.442695, %v808_v23  ;;  %v823_v27 = vmul.f32 1.442695, %v809_v24 }
 0x33e   :  { %3827 = vmatmul.mubr.msk.f32.vlgmr.msra.gmra.mrb[8].mxu1 %vm164_vm2, %v4089_v25  ;;  %v802_v28 = vpop.xlane.xlu0 %801  ;;  %v830_v29 = vsel %vm164_vm2, %v4089_v25, 0.0  ;;  %v1384_v40 = vpop.permute.xlu1 %1383 }
 0x33f   :  { %4096 = vpow2.f32 %v821_v26  ;;  %3835 = vmatpush3.msra.mxu1 %v1080_v6  ;;  %v810_v30 = vsub.f32 %v775_v57, %v802_v28  ;;  %831 = vadd.xlane.f32.xlu0 %v830_v29 }
 0x340   :  { %4098 = vpow2.f32 %v823_v27  ;;  %3836 = vmatprep.mubr.msk.f32.mxu1 %vm4193_vm1, %v4190_v10  ;;  %3844 = vmatprep.subr.mxu1 %v4190_v10 }
 0x341   :  { %v4091_v31 = vpop.eup %4090  ;;  %v825_v32 = vmul.f32 1.442695, %v810_v30 }
 0x342   :  { %3832 = vmatmul.mubr.msk.f32.vlgmr.msra.gmra.mrb[12].mxu0 %vm164_vm2, %v4091_v31  ;;  %v833_v33 = vsel %vm164_vm2, %v4091_v31, 0.0  ;;  %v1308_v38 = vpop.permute.xlu0 %1307 }
 0x343   :  { %4100 = vpow2.f32 %v825_v32  ;;  %3840 = vmatpush3.msra.mxu0 %v4361_v37  ;;  %834 = vadd.xlane.f32.xlu1 %v833_v33 }
 0x344   :  { %3841 = vmatprep.mubr.msk.f32.mxu0 %vm4193_vm1, %v4190_v10  ;;  %3849 = vmatprep.subr.mxu0 %v4190_v10 }
 0x345   :  { %v4093_v34 = vpop.eup %4092 }
 0x346   :  { %v4095_v35 = vpop.eup %4094  ;;  %3837 = vmatmul.mubr.msk.f32.vlgmr.msra.gmra.mrb[10].mxu1 %vm164_vm2, %v4093_v34  ;;  %v836_v36 = vsel %vm164_vm2, %v4093_v34, 0.0 }
 0x347   :  { %3842 = vmatmul.mubr.msk.f32.vlgmr.msra.gmra.mrb[14].mxu0 %vm164_vm2, %v4095_v35  ;;  %3845 = vmatpush3.msra.mxu1 %v1232_v2  ;;  %v839_v46 = vsel %vm164_vm2, %v4095_v35, 0.0 }
 0x348   :  { %3850 = vmatpush3.msra.mxu0 %v1308_v38  ;;  %837 = vadd.xlane.f32.xlu0 %v836_v36 }
 0x349   :  { %v4097_v39 = vpop.eup %4096  ;;  %3846 = vmatprep.mubr.msk.f32.mxu1 %vm4193_vm1, %v4190_v10  ;;  %3851 = vmatprep.mubr.msk.f32.mxu0 %vm4193_vm1, %v4190_v10 }
 0x34a   :  { %v4099_v37 = vpop.eup %4098  ;;  %3854 = vmatprep.subr.mxu1 %v4190_v10  ;;  %3847 = vmatmul.mubr.msk.f32.vlgmr.msra.gmra.mrb[12].mxu1 %vm164_vm2, %v4097_v39  ;;  %v842_v41 = vsel %vm164_vm2, %v4097_v39, 0.0 }
 0x34b   :  { %3852 = vmatmul.mubr.msk.f32.vlgmr.msra.gmra.mrb[16].mxu0 %vm164_vm2, %v4099_v37  ;;  %3855 = vmatpush3.msra.mxu1 %v1384_v40  ;;  %v845_v42 = vsel %vm164_vm2, %v4099_v37, 0.0 }
 0x34c   :  { %843 = vadd.xlane.f32.xlu0 %v842_v41  ;;  %846 = vadd.xlane.f32.xlu1 %v845_v42 }
 0x34d   :  { %v4101_v43 = vpop.eup %4100  ;;  %3856 = vmatprep.mubr.msk.f32.mxu1 %vm4193_vm1, %v4190_v10 }
 0x34e   :  { %3857 = vmatmul.mubr.msk.f32.vlgmr.msra.gmra.mrb[14].mxu1 %vm164_vm2, %v4101_v43  ;;  %v848_v44 = vsel %vm164_vm2, %v4101_v43, 0.0 }
 0x350   :  { %849 = vadd.xlane.f32.xlu0 %v848_v44  ;;  %828 = vadd.xlane.f32.xlu1 %v827_v45 }
 0x354   :  { %840 = vadd.xlane.f32.xlu0 %v839_v46 }
 0x3ab   :  { %v923_v47 = vpop.f32.mrb[10].mxu0 }
 0x3ac   :  { %v3823_v48 = vpop.f32.mrb[11].mxu0 }
 0x3cc   :  { %v832_v49 = vpop.xlane.xlu0 %831 }
 0x3cd   :  { %4102 = vrcp.f32 %v832_v49 }
 0x3d0   :  { %v835_v50 = vpop.xlane.xlu1 %834 }
 0x3d1   :  { %4104 = vrcp.f32 %v835_v50 }
 0x3d5   :  { %v838_v51 = vpop.xlane.xlu0 %837 }
 0x3d7   :  { %v4103_v53 = vpop.eup %4102 }
 0x3d9   :  { %v844_v52 = vpop.xlane.xlu0 %843  ;;  %v847_v54 = vpop.xlane.xlu1 %846 }
 0x3da   :  { %4106 = vrcp.f32 %v844_v52 }
 0x3db   :  { %4108 = vrcp.f32 %v847_v54  ;;  %v4105_v59 = vpop.eup %4104  ;;  %v1557_v54 = vld [vmem:[%s4748_s5 + $0x18] sm:$0xff] }
 0x3dc   :  { %4110 = vrcp.f32 %v838_v51  ;;  %v1555_v51 = vld [vmem:[%s4748_s5 + $0x8] sm:$0xff] }
 0x3dd   :  { %v850_v58 = vpop.xlane.xlu0 %849  ;;  %v829_v20 = vpop.xlane.xlu1 %828 }
 0x3de   :  { %4112 = vrcp.f32 %v850_v58  ;;  %v1650_v58 = vld [vmem:[%s4750_s7 + $0x10] sm:$0xff] }
 0x3df   :  { %4114 = vrcp.f32 %v829_v20  ;;  %v1654_v20 = vld [vmem:[%s4750_s7 + $0x30] sm:$0xff] }
 0x3e1   :  { %v841_v21 = vpop.xlane.xlu0 %840 }
 0x3e2   :  { %4116 = vrcp.f32 %v841_v21  ;;  %v1655_v21 = vld [vmem:[%s4750_s7 + $0x38] sm:$0xff] }
 0x3e4   :  { %v4107_v3 = vpop.eup %4106 }
 0x3e5   :  { %v4109_v6 = vpop.eup %4108 }
 0x3e6   :  { %v4111_v14 = vpop.eup %4110 }
 0x3e8   :  { %v4113_v15 = vpop.eup %4112 }
 0x3e9   :  { %v4115_v24 = vpop.eup %4114 }
 0x3ea   :  { %v1460_v28 = vmul.f32 %v4115_v24, %v923_v47 }
 0x3ec   :  { %v4117_v25 = vpop.eup %4116 }
 0x411   :  { %v999_v55 = vpop.f32.mrb[8].mxu1 }
 0x412   :  { %v1462_v56 = vmul.f32 %v4103_v53, %v999_v55  ;;  %v3828_v57 = vpop.f32.mrb[9].mxu1  ;;  %v1556_v53 = vld [vmem:[%s4748_s5 + $0x10] sm:$0xff] }
 0x413   :  { %v4022_v55 = vpack.c.bf16 %v1557_v54, %v1556_v53  ;;  %v1649_v57 = vld [vmem:[%s4750_s7 + $0x8] sm:$0xff] }
 0x414   :  { %1477 = vrot.lane.b32.xlu1 %v1462_v56, %s4197_s16  ;;  %v1648_v56 = vld [vmem:[%s4750_s7] sm:$0xff] }
 0x415   :  { %v1075_v60 = vpop.f32.mrb[12].mxu0 }
 0x416   :  { %v1464_v61 = vmul.f32 %v4105_v59, %v1075_v60  ;;  %v3833_v62 = vpop.f32.mrb[13].mxu0  ;;  %v4026_v59 = vpack.c.bf16 %v1649_v57, %v1648_v56  ;;  %v1651_v60 = vld [vmem:[%s4750_s7 + $0x18] sm:$0xff] }
 0x417   :  { %v1652_v62 = vld [vmem:[%s4750_s7 + $0x20] sm:$0xff] }
 0x418   :  { %1485 = vrot.lane.b32.xlu1 %v1464_v61, %s4198_s17  ;;  %v4030_v61 = vpack.c.bf16 %v1651_v60, %v1650_v58  ;;  %4027 = vmatprep.subr.bf16.mxu1 %v4026_v59  ;;  %v3598_v60 = vld [vmem:[%s4752_s9] ss:$0 sm:$0xff] }
 0x419   :  { %v1151_v63 = vpop.f32.mrb[10].mxu1  ;;  %4029 = vmatpush3.bf16.msra.mxu1 %v4026_v59 }
 0x41a   :  { %v1227_v0 = vpop.f32.mrb[14].mxu0  ;;  %v3838_v1 = vpop.f32.mrb[11].mxu1  ;;  %v1466_v17 = vmul.f32 %v4111_v14, %v1151_v63  ;;  %v1653_v63 = vld [vmem:[%s4750_s7 + $0x28] sm:$0xff]  ;;  %4031 = vmatprep.subr.bf16.mxu1 %v4030_v61 }
 0x41b   :  { %v3843_v2 = vpop.f32.mrb[15].mxu0  ;;  %v1468_v26 = vmul.f32 %v4117_v25, %v1227_v0  ;;  %v4034_v0 = vpack.c.bf16 %v1653_v63, %v1652_v62 }
 0x41d   :  { %v1303_v4 = vpop.f32.mrb[12].mxu1  ;;  %4033 = vmatpush3.bf16.msra.mxu1 %v4030_v61 }
 0x41e   :  { %v1470_v8 = vmul.f32 %v4107_v3, %v1303_v4  ;;  %v1379_v9 = vpop.f32.mrb[16].mxu0  ;;  %v3848_v11 = vpop.f32.mrb[13].mxu1  ;;  %4035 = vmatprep.subr.bf16.mxu1 %v4034_v0 }
 0x41f   :  { %v1472_v12 = vmul.f32 %v4109_v6, %v1379_v9  ;;  %v3853_v13 = vpop.f32.mrb[17].mxu0  ;;  %v3590_v11 = vld [vmem:[%s4746_s3] ss:$0 sm:$0xff] }
 0x420   :  { %1479 = vrot.lane.b32.xlu0 %v1470_v8, %s4197_s16  ;;  %v3591_v13 = vld [vmem:[%s4747_s4] ss:$0 sm:$0xff] }
 0x421   :  { %1487 = vrot.lane.b32.xlu1 %v1472_v12, %s4198_s17  ;;  %v1455_v16 = vpop.f32.mrb[14].mxu1  ;;  %4037 = vmatpush3.bf16.msra.mxu1 %v4034_v0 }
 0x422   :  { %v1474_v18 = vmul.f32 %v4113_v15, %v1455_v16  ;;  %v3858_v19 = vpop.f32.mrb[15].mxu1 }
 0x424   :  { %1493 = vrot.lane.b32.xlu0 %v1466_v17, %s4199_s18 }
 0x425   :  { %1495 = vrot.lane.b32.xlu1 %v1474_v18, %s4199_s18 }
 0x486   :  { %v1478_v22 = vpop.permute.xlu1 %1477 }
 0x487   :  { %v1499_v31 = vsel %vm164_vm2, %v1460_v28, %v1478_v22  ;;  %v4038_v22 = vpack.c.bf16 %v1655_v21, %v1654_v20 }
 0x489   :  { %4039 = vmatprep.subr.bf16.mxu1 %v4038_v22 }
 0x48a   :  { %v1486_v23 = vpop.permute.xlu1 %1485  ;;  %4041 = vmatpush3.bf16.msra.mxu1 %v4038_v22 }
 0x48b   :  { %v1502_v32 = vsel %vm1501_vm3, %v1499_v31, %v1486_v23  ;;  %3905 = vmatprep.subr.mxu1 %v4190_v10  ;;  %v3592_v23 = vld [vmem:[%s4749_s6] ss:$0 sm:$0xff] }
 0x492   :  { %v1480_v27 = vpop.permute.xlu0 %1479 }
 0x493   :  { %v1488_v29 = vpop.permute.xlu1 %1487  ;;  %v1500_v30 = vsel %vm164_vm2, %v1468_v26, %v1480_v27 }
 0x494   :  { %v1503_v34 = vsel %vm1501_vm3, %v1500_v30, %v1488_v29  ;;  %v3595_v30 = vld [vmem:[%s4751_s8] ss:$0 sm:$0xff] }
 0x496   :  { %v1494_v33 = vpop.permute.xlu0 %1493 }
 0x497   :  { %v1505_v35 = vsel %vm1504_vm4, %v1502_v32, %v1494_v33  ;;  %v1496_v36 = vpop.permute.xlu1 %1495 }
 0x498   :  { %v1506_v38 = vsel %vm1504_vm4, %v1503_v34, %v1496_v36  ;;  %v1507_v39 = vadd.f32 %v1505_v35, %v4277_v5 }
 0x499   :  { %v1508_v37 = vadd.f32 %v1506_v38, %v4284_v7  ;;  %v1554_v7 = vld [vmem:[%s4748_s5] sm:$0xff] }
 0x49a   :  { %v1509_v40 = vsel %vm52_vm0, %v1507_v39, 0.0  ;;  %v4018_v52 = vpack.c.bf16 %v1555_v51, %v1554_v7  ;;  %v3602_v7 = vld [vmem:[%s4744_s1 + $0x30] sm:$0xff]  ;;  %v3603_v51 = vld [vmem:[%s4744_s1 + $0x38] sm:$0xff] }
 0x49b   :  { %1510 = vadd.xlane.f32.xlu0 %v1509_v40  ;;  %v1512_v41 = vsel %vm52_vm0, %v1508_v37, 0.0 }
 0x49c   :  { %1513 = vadd.xlane.f32.xlu1 %v1512_v41  ;;  %4019 = vmatprep.subr.bf16.mxu0 %v4018_v52 }
 0x49d   :  { %4021 = vmatpush3.bf16.msra.mxu0 %v4018_v52  ;;  %v4046_v52 = vpack.c.bf16 %v3603_v51, %v3602_v7 }
 0x49e   :  { %4023 = vmatprep.subr.bf16.mxu0 %v4022_v55 }
 0x4a1   :  { %4025 = vmatpush3.bf16.msra.mxu0 %v4022_v55 }
 0x528   :  { %v1511_v42 = vpop.xlane.xlu0 %1510 }
 0x529   :  { %v1516_v43 = vmul.f32 0.03125, %v1511_v42  ;;  %v1514_v44 = vpop.xlane.xlu1 %1513 }
 0x52a   :  { %v1517_v45 = vmul.f32 0.03125, %v1514_v44 }
 0x52b   :  { %v1518_v46 = vsub.f32 %v1507_v39, %v1516_v43 }
 0x52c   :  { %v1519_v47 = vsub.f32 %v1508_v37, %v1517_v45 }
 0x52d   :  { %v1520_v48 = vmul.f32 %v1518_v46, %v1518_v46 }
 0x52e   :  { %v1521_v50 = vmul.f32 %v1519_v47, %v1519_v47 }
 0x52f   :  { %v1522_v49 = vsel %vm52_vm0, %v1520_v48, 0.0 }
 0x530   :  { %1523 = vadd.xlane.f32.xlu0 %v1522_v49  ;;  %v1525_v5 = vsel %vm52_vm0, %v1521_v50, 0.0  ;;  %v3600_v49 = vld [vmem:[%s4744_s1 + $0x20] sm:$0xff]  ;;  %v3601_v50 = vld [vmem:[%s4744_s1 + $0x28] sm:$0xff] }
 0x534   :  { %1526 = vadd.xlane.f32.xlu0 %v1525_v5  ;;  %v4042_v5 = vpack.c.bf16 %v3601_v50, %v3600_v49 }
 0x536   :  { %4043 = vmatprep.subr.bf16.mxu0 %v4042_v5 }
 0x5bd   :  { %v1524_v1 = vpop.xlane.xlu0 %1523 }
 0x5be   :  { %v1528_v2 = vmul.f32 0.03125, %v1524_v1  ;;  %v3599_v1 = vld [vmem:[%s4753_s10] ss:$0 sm:$0xff] }
 0x5c0   :  { %v1530_v3 = vadd.f32 1e-05, %v1528_v2 }
 0x5c1   :  { %v1527_v4 = vpop.xlane.xlu0 %1526 }
 0x5c2   :  { %4118 = vrsqrt.f32 %v1530_v3  ;;  %v1529_v6 = vmul.f32 0.03125, %v1527_v4 }
 0x5c4   :  { %v1531_v8 = vadd.f32 1e-05, %v1529_v6  ;;  %v3605_v6 = vld [vmem:[%s4745_s2 + $0x1] ss:$0 sm:$0xff] }
 0x5c6   :  { %4120 = vrsqrt.f32 %v1531_v8 }
 0x5cc   :  { %v4119_v9 = vpop.eup %4118 }
 0x5cd   :  { %v1534_v12 = vmul.f32 %v4119_v9, %v1518_v46 }
 0x5cf   :  { %v1543_v14 = vmul.f32 %v3590_v11, %v1534_v12 }
 0x5d0   :  { %v4121_v15 = vpop.eup %4120 }
 0x5d1   :  { %v1535_v16 = vmul.f32 %v4121_v15, %v1519_v47  ;;  %v1552_v17 = vadd.f32 %v3591_v13, %v1543_v14 }
 0x5d3   :  { %v1544_v18 = vmul.f32 %v3590_v11, %v1535_v16  ;;  %3867 = vmatprep.mubr.msk.f32.mxu0 %vm52_vm0, %v1552_v17 }
 0x5d5   :  { %v1553_v19 = vadd.f32 %v3591_v13, %v1544_v18 }
 0x5d7   :  { %3868 = vmatmul.mubr.msk.f32.vlgmr.msra.gmra.mrb[18].mxu0 %vm52_vm0, %v1553_v19 }
 0x5d8   :  { %4045 = vmatpush3.bf16.msra.mxu0 %v4042_v5 }
 0x5d9   :  { %4047 = vmatprep.subr.bf16.mxu0 %v4046_v52 }
 0x5dc   :  { %4049 = vmatpush3.bf16.msra.mxu0 %v4046_v52 }
 0x5dd   :  { %3900 = vmatprep.subr.mxu0 %v4190_v10 }
 0x6aa   :  { %v3869_v24 = vpop.f32.mrb[18].mxu0 }
 0x6ab   :  { %v1643_v25 = vadd.f32 %v3869_v24, %v3592_v23  ;;  %v1637_v26 = vpop.f32.mrb[19].mxu0 }
 0x6ac   :  { %v1638_v27 = vadd.f32 %v3592_v23, %v1637_v26 }
 0x6ad   :  { %v1647_v29 = vmax.f32 %v1643_v25, 0.0 }
 0x6ae   :  { %v1646_v28 = vmax.f32 %v1638_v27, 0.0 }
 0x6b0   :  { %3886 = vmatprep.mubr.msk.f32.mxu1 %vm1663_vm5, %v1646_v28 }
 0x6b1   :  { %3887 = vmatmul.mubr.msk.f32.vlgmr.msra.gmra.mrb[16].mxu1 %vm1663_vm5, %v1647_v29 }
 0x6b2   :  { %3907 = vmatprep.mubr.msk.f32.mxu1 %vm4193_vm1, %v4190_v10 }
 0x784   :  { %v3888_v31 = vpop.f32.mrb[16].mxu1 }
 0x785   :  { %v1742_v32 = vadd.f32 %v3888_v31, %v3595_v30  ;;  %v1736_v33 = vpop.f32.mrb[17].mxu1 }
 0x786   :  { %v1737_v34 = vadd.f32 %v3595_v30, %v1736_v33 }
 0x787   :  { %v1746_v35 = vadd.f32 %v1742_v32, %v1553_v19 }
 0x788   :  { %v1745_v36 = vadd.f32 %v1737_v34, %v1552_v17 }
 0x789   :  { %v1750_v38 = vsel %vm52_vm0, %v1746_v35, 0.0 }
 0x78a   :  { %1751 = vadd.xlane.f32.xlu0 %v1750_v38  ;;  %v1747_v39 = vsel %vm52_vm0, %v1745_v36, 0.0 }
 0x78b   :  { %1748 = vadd.xlane.f32.xlu1 %v1747_v39 }
 0x817   :  { %v1752_v37 = vpop.xlane.xlu0 %1751 }
 0x818   :  { %v1754_v40 = vmul.f32 0.03125, %v1752_v37  ;;  %v1749_v41 = vpop.xlane.xlu1 %1748 }
 0x819   :  { %v1753_v42 = vmul.f32 0.03125, %v1749_v41 }
 0x81a   :  { %v1756_v43 = vsub.f32 %v1746_v35, %v1754_v40 }
 0x81b   :  { %v1755_v44 = vsub.f32 %v1745_v36, %v1753_v42 }
 0x81c   :  { %v1758_v45 = vmul.f32 %v1756_v43, %v1756_v43 }
 0x81d   :  { %v1757_v46 = vmul.f32 %v1755_v44, %v1755_v44 }
 0x81e   :  { %v1762_v47 = vsel %vm52_vm0, %v1758_v45, 0.0 }
 0x81f   :  { %1763 = vadd.xlane.f32.xlu0 %v1762_v47  ;;  %v1759_v48 = vsel %vm52_vm0, %v1757_v46, 0.0 }
 0x820   :  { %1760 = vadd.xlane.f32.xlu1 %v1759_v48 }
 0x8ac   :  { %v1764_v53 = vpop.xlane.xlu0 %1763 }
 0x8ad   :  { %v1766_v54 = vmul.f32 0.03125, %v1764_v53  ;;  %v1761_v55 = vpop.xlane.xlu1 %1760 }
 0x8ae   :  { %v1765_v56 = vmul.f32 0.03125, %v1761_v55 }
 0x8af   :  { %v1768_v57 = vadd.f32 1e-05, %v1766_v54 }
 0x8b0   :  { %v1767_v58 = vadd.f32 1e-05, %v1765_v56 }
 0x8b1   :  { %4122 = vrsqrt.f32 %v1768_v57 }
 0x8b2   :  { %4124 = vrsqrt.f32 %v1767_v58 }
 0x8bb   :  { %v4123_v59 = vpop.eup %4122 }
 0x8bc   :  { %v4125_v61 = vpop.eup %4124  ;;  %v1772_v62 = vmul.f32 %v4123_v59, %v1756_v43 }
 0x8bd   :  { %v1771_v63 = vmul.f32 %v4125_v61, %v1755_v44 }
 0x8be   :  { %v1781_v0 = vmul.f32 %v3598_v60, %v1772_v62 }
 0x8bf   :  { %v1780_v2 = vmul.f32 %v3598_v60, %v1771_v63 }
 0x8c0   :  { %v4516_v4 = vadd.f32 %v3599_v1, %v1781_v0 }
 0x8c1   :  { %v4514_v3 = vadd.f32 %v3599_v1, %v1780_v2 }
 0x8c3   :  { %3897 = vmatprep.mubr.msk.f32.mxu0 %vm52_vm0, %v4514_v3 }
 0x8c4   :  { %3898 = vmatmul.mubr.msk.f32.vlgmr.msra.gmra.mrb[20].mxu0 %vm52_vm0, %v4516_v4 }
 0x8c5   :  { %3902 = vmatprep.mubr.msk.f32.mxu0 %vm4193_vm1, %v4190_v10 }
 0x997   :  { %v3899_v8 = vpop.f32.mrb[20].mxu0 }
 0x998   :  { %v1876_v9 = vpop.f32.mrb[21].mxu0  ;;  %v1882_v12 = vadd.f32 %v3899_v8, %v3605_v6 }
 0x999   :  { %v1877_v11 = vadd.f32 %v3605_v6, %v1876_v9 }
 0x99a   :  { %v1909_v28 = vmul.f32 0.35355338, %v1882_v12 }
 0x99b   :  { %1893 = vrot.lane.b32.xlu0 %v1877_v11, %s4194_s13  ;;  %1887 = vrot.lane.b32.xlu1 %v1877_v11, %s4192_s0  ;;  %v1905_v19 = vmul.f32 0.35355338, %v1877_v11 }
 0x99f   :  { %1895 = vrot.lane.b32.xlu0 %v1882_v12, %s4194_s13  ;;  %1899 = vrot.lane.b32.xlu1 %v1877_v11, %s4191_s12 }
 0x9a3   :  { %1913 = vrot.lane.b32.xlu0 %v1877_v11, %s4195_s14  ;;  %1889 = vrot.lane.b32.xlu1 %v1882_v12, %s4192_s0 }
 0x9a7   :  { %1901 = vrot.lane.b32.xlu1 %v1882_v12, %s4191_s12 }
 0xa0d   :  { %v1894_v13 = vpop.permute.xlu0 %1893  ;;  %v1888_v14 = vpop.permute.xlu1 %1887 }
 0xa0e   :  { %2067 = vrot.lane.b32.xlu0 %v1894_v13, %s4195_s14  ;;  %1990 = vrot.lane.b32.xlu1 %v1888_v14, %s4195_s14  ;;  %v1907_v23 = vmul.f32 0.35355338, %v1894_v13  ;;  %v1906_v24 = vmul.f32 0.35355338, %v1888_v14 }
 0xa11   :  { %v4536_v15 = vpop.permute.xlu0 %1895  ;;  %v1900_v16 = vpop.permute.xlu1 %1899 }
 0xa12   :  { %2221 = vrot.lane.b32.xlu0 %v1882_v12, %s4195_s14  ;;  %2144 = vrot.lane.b32.xlu1 %v1900_v16, %s4195_s14  ;;  %v1908_v27 = vmul.f32 0.35355338, %v1900_v16  ;;  %v1911_v31 = vmul.f32 0.35355338, %v4536_v15 }
 0xa15   :  { %v1914_v17 = vpop.permute.xlu0 %1913  ;;  %v1890_v18 = vpop.permute.xlu1 %1889 }
 0xa16   :  { %2375 = vrot.lane.b32.xlu0 %v4536_v15, %s4195_s14  ;;  %3901 = vmatpush3.xpose.msk.msra.mxu0 %vm164_vm2, %v1914_v17  ;;  %v1910_v32 = vmul.f32 0.35355338, %v1890_v18 }
 0xa17   :  { %2298 = vrot.lane.b32.xlu1 %v1890_v18, %s4195_s14  ;;  %3910 = vmatprep.subr.mxu0 %v4190_v10 }
 0xa19   :  { %v4545_v20 = vpop.permute.xlu1 %1901  ;;  %3903 = vmatmul.mubr.msk.f32.vlgmr.msra.gmra.mrb[22].mxu0 %vm164_vm2, %v1905_v19 }
 0xa1a   :  { %2905 = vrot.lane.b32.xlu0 %v1882_v12, %s4196_s15  ;;  %3912 = vmatprep.mubr.msk.f32.mxu0 %vm4193_vm1, %v4190_v10  ;;  %v1912_v35 = vmul.f32 0.35355338, %v4545_v20 }
 0xa1b   :  { %2452 = vrot.lane.b32.xlu1 %v4545_v20, %s4195_s14 }
 0xa1e   :  { %2677 = vrot.lane.b32.xlu0 %v1888_v14, %s4196_s15 }
 0xa1f   :  { %2601 = vrot.lane.b32.xlu1 %v1877_v11, %s4196_s15 }
 0xa23   :  { %2981 = vrot.lane.b32.xlu1 %v1890_v18, %s4196_s15 }
 0xa27   :  { %2753 = vrot.lane.b32.xlu1 %v1894_v13, %s4196_s15 }
 0xa2b   :  { %2829 = vrot.lane.b32.xlu1 %v1900_v16, %s4196_s15 }
 0xa80   :  { %v2068_v21 = vpop.permute.xlu0 %2067  ;;  %v1991_v22 = vpop.permute.xlu1 %1990 }
 0xa81   :  { %3906 = vmatpush3.xpose.msk.msra.mxu1 %vm164_vm2, %v1991_v22  ;;  %3911 = vmatpush3.xpose.msk.msra.mxu0 %vm164_vm2, %v2068_v21 }
 0xa82   :  { %3915 = vmatprep.subr.mxu1 %v4190_v10  ;;  %3920 = vmatprep.subr.mxu0 %v4190_v10 }
 0xa84   :  { %v2222_v25 = vpop.permute.xlu0 %2221  ;;  %3908 = vmatmul.mubr.msk.f32.vlgmr.msra.gmra.mrb[18].mxu1 %vm164_vm2, %v1906_v24  ;;  %v2145_v26 = vpop.permute.xlu1 %2144  ;;  %3913 = vmatmul.mubr.msk.f32.vlgmr.msra.gmra.mrb[24].mxu0 %vm164_vm2, %v1907_v23 }
 0xa85   :  { %3916 = vmatpush3.xpose.msk.msra.mxu1 %vm164_vm2, %v2145_v26  ;;  %3921 = vmatpush3.xpose.msk.msra.mxu0 %vm164_vm2, %v2222_v25 }
 0xa86   :  { %3917 = vmatprep.mubr.msk.f32.mxu1 %vm4193_vm1, %v4190_v10  ;;  %3922 = vmatprep.mubr.msk.f32.mxu0 %vm4193_vm1, %v4190_v10 }
 0xa87   :  { %3925 = vmatprep.subr.mxu1 %v4190_v10  ;;  %3930 = vmatprep.subr.mxu0 %v4190_v10 }
 0xa88   :  { %v2376_v29 = vpop.permute.xlu0 %2375  ;;  %3918 = vmatmul.mubr.msk.f32.vlgmr.msra.gmra.mrb[20].mxu1 %vm164_vm2, %v1908_v27  ;;  %3923 = vmatmul.mubr.msk.f32.vlgmr.msra.gmra.mrb[26].mxu0 %vm164_vm2, %v1909_v28 }
 0xa89   :  { %v2299_v30 = vpop.permute.xlu1 %2298  ;;  %3931 = vmatpush3.xpose.msk.msra.mxu0 %vm164_vm2, %v2376_v29  ;;  %3927 = vmatprep.mubr.msk.f32.mxu1 %vm4193_vm1, %v4190_v10 }
 0xa8a   :  { %3926 = vmatpush3.xpose.msk.msra.mxu1 %vm164_vm2, %v2299_v30  ;;  %3932 = vmatprep.mubr.msk.f32.mxu0 %vm4193_vm1, %v4190_v10 }
 0xa8b   :  { %3935 = vmatprep.subr.mxu1 %v4190_v10  ;;  %3940 = vmatprep.subr.mxu0 %v4190_v10 }
 0xa8c   :  { %v4583_v33 = vpop.permute.xlu0 %2905  ;;  %3933 = vmatmul.mubr.msk.f32.vlgmr.msra.gmra.mrb[28].mxu0 %vm164_vm2, %v1911_v31 }
 0xa8d   :  { %3928 = vmatmul.mubr.msk.f32.vlgmr.msra.gmra.mrb[22].mxu1 %vm164_vm2, %v1910_v32  ;;  %v2453_v34 = vpop.permute.xlu1 %2452  ;;  %3942 = vmatprep.mubr.msk.f32.mxu0 %vm4193_vm1, %v4190_v10 }
 0xa8e   :  { %3936 = vmatpush3.xpose.msk.msra.mxu1 %vm164_vm2, %v2453_v34  ;;  %3937 = vmatprep.mubr.msk.f32.mxu1 %vm4193_vm1, %v4190_v10 }
 0xa8f   :  { %3945 = vmatprep.subr.mxu1 %v4190_v10 }
 0xa90   :  { %v2678_v36 = vpop.permute.xlu0 %2677 }
 0xa91   :  { %3938 = vmatmul.mubr.msk.f32.vlgmr.msra.gmra.mrb[24].mxu1 %vm164_vm2, %v1912_v35  ;;  %v2602_v38 = vpop.permute.xlu1 %2601 }
 0xa92   :  { %3941 = vmatpush3.msra.mxu0 %v2602_v38  ;;  %3946 = vmatpush3.msra.mxu1 %v2678_v36 }
 0xa93   :  { %3950 = vmatprep.subr.mxu0 %v4190_v10  ;;  %3947 = vmatprep.mubr.msk.f32.mxu1 %vm4193_vm1, %v4190_v10 }
 0xa94   :  { %3955 = vmatprep.subr.mxu1 %v4190_v10 }
 0xa95   :  { %v2982_v63 = vpop.permute.xlu1 %2981 }
 0xa99   :  { %v2754_v1 = vpop.permute.xlu1 %2753 }
 0xa9d   :  { %v2830_v2 = vpop.permute.xlu1 %2829 }
 0xaec   :  { %v1986_v39 = vpop.f32.mrb[22].mxu0 }
 0xaed   :  { %v3904_v37 = vpop.f32.mrb[23].mxu0  ;;  %v2529_v40 = vsel %vm164_vm2, %v1986_v39, -inf }
 0xaee   :  { %2530 = vmax.xlane.f32.xlu0 %v2529_v40 }
 0xb57   :  { %v2063_v41 = vpop.f32.mrb[18].mxu1  ;;  %v2140_v42 = vpop.f32.mrb[24].mxu0 }
 0xb58   :  { %v3909_v43 = vpop.f32.mrb[19].mxu1  ;;  %v3914_v44 = vpop.f32.mrb[25].mxu0  ;;  %v2532_v45 = vsel %vm164_vm2, %v2063_v41, -inf  ;;  %v2535_v46 = vsel %vm164_vm2, %v2140_v42, -inf }
 0xb59   :  { %2533 = vmax.xlane.f32.xlu1 %v2532_v45  ;;  %2536 = vmax.xlane.f32.xlu0 %v2535_v46 }
 0xb5b   :  { %v2217_v47 = vpop.f32.mrb[20].mxu1  ;;  %v2294_v48 = vpop.f32.mrb[26].mxu0 }
 0xb5c   :  { %v3919_v49 = vpop.f32.mrb[21].mxu1  ;;  %v3924_v50 = vpop.f32.mrb[27].mxu0  ;;  %v2538_v5 = vsel %vm164_vm2, %v2217_v47, -inf  ;;  %v2541_v7 = vsel %vm164_vm2, %v2294_v48, -inf }
 0xb5d   :  { %2539 = vmax.xlane.f32.xlu0 %v2538_v5  ;;  %2542 = vmax.xlane.f32.xlu1 %v2541_v7 }
 0xb5f   :  { %v2448_v51 = vpop.f32.mrb[28].mxu0 }
 0xb60   :  { %v2371_v52 = vpop.f32.mrb[22].mxu1  ;;  %v3934_v53 = vpop.f32.mrb[29].mxu0  ;;  %v2547_v54 = vsel %vm164_vm2, %v2448_v51, -inf }
 0xb61   :  { %v3929_v55 = vpop.f32.mrb[23].mxu1  ;;  %v2544_v56 = vsel %vm164_vm2, %v2371_v52, -inf  ;;  %2548 = vmax.xlane.f32.xlu1 %v2547_v54 }
 0xb62   :  { %2545 = vmax.xlane.f32.xlu0 %v2544_v56 }
 0xb64   :  { %v2525_v57 = vpop.f32.mrb[24].mxu1 }
 0xb65   :  { %v3939_v58 = vpop.f32.mrb[25].mxu1  ;;  %v2550_v59 = vsel %vm164_vm2, %v2525_v57, -inf }
 0xb66   :  { %2551 = vmax.xlane.f32.xlu0 %v2550_v59 }
 0xb72   :  { %3133 = vrot.lane.b32.xlu1 %v4545_v20, %s4196_s15 }
 0xb7b   :  { %v2531_v60 = vpop.xlane.xlu0 %2530 }
 0xb7c   :  { %v2553_v61 = vsub.f32 %v1986_v39, %v2531_v60  ;;  %3057 = vrot.lane.b32.xlu0 %v4536_v15, %s4196_s15 }
 0xb7e   :  { %v2561_v62 = vmul.f32 1.442695, %v2553_v61 }
 0xb80   :  { %4126 = vpow2.f32 %v2561_v62 }
 0xb8a   :  { %v4611_v0 = vpop.eup %4126 }
 0xb8b   :  { %3943 = vmatmul.mubr.msk.f32.vlgmr.msra.gmra.mrb[30].mxu0 %vm164_vm2, %v4611_v0  ;;  %v2577_v44 = vsel %vm164_vm2, %v4611_v0, 0.0 }
 0xb8c   :  { %3951 = vmatpush3.msra.mxu0 %v2754_v1  ;;  %3952 = vmatprep.mubr.msk.f32.mxu0 %vm4193_vm1, %v4190_v10 }
 0xb8d   :  { %3960 = vmatprep.subr.mxu0 %v4190_v10 }
 0xbe6   :  { %v2534_v6 = vpop.xlane.xlu1 %2533  ;;  %v2537_v8 = vpop.xlane.xlu0 %2536 }
 0xbe7   :  { %v2554_v9 = vsub.f32 %v2063_v41, %v2534_v6  ;;  %v2555_v11 = vsub.f32 %v2140_v42, %v2537_v8 }
 0xbe9   :  { %v2563_v12 = vmul.f32 1.442695, %v2554_v9  ;;  %v2565_v13 = vmul.f32 1.442695, %v2555_v11 }
 0xbea   :  { %v2540_v14 = vpop.xlane.xlu0 %2539  ;;  %v2543_v15 = vpop.xlane.xlu1 %2542 }
 0xbeb   :  { %4128 = vpow2.f32 %v2563_v12  ;;  %v2556_v16 = vsub.f32 %v2217_v47, %v2540_v14  ;;  %v2557_v17 = vsub.f32 %v2294_v48, %v2543_v15 }
 0xbec   :  { %4130 = vpow2.f32 %v2565_v13 }
 0xbed   :  { %v2567_v18 = vmul.f32 1.442695, %v2556_v16  ;;  %v2569_v19 = vmul.f32 1.442695, %v2557_v17 }
 0xbee   :  { %v2549_v20 = vpop.xlane.xlu1 %2548 }
 0xbef   :  { %4132 = vpow2.f32 %v2567_v18  ;;  %v2546_v21 = vpop.xlane.xlu0 %2545  ;;  %v2559_v22 = vsub.f32 %v2448_v51, %v2549_v20 }
 0xbf0   :  { %4134 = vpow2.f32 %v2569_v19  ;;  %v2558_v23 = vsub.f32 %v2371_v52, %v2546_v21 }
 0xbf1   :  { %v2573_v24 = vmul.f32 1.442695, %v2559_v22 }
 0xbf2   :  { %v2571_v25 = vmul.f32 1.442695, %v2558_v23  ;;  %v3134_v40 = vpop.permute.xlu1 %3133 }
 0xbf3   :  { %4136 = vpow2.f32 %v2573_v24  ;;  %v2552_v26 = vpop.xlane.xlu0 %2551 }
 0xbf4   :  { %4138 = vpow2.f32 %v2571_v25  ;;  %v2560_v27 = vsub.f32 %v2525_v57, %v2552_v26 }
 0xbf5   :  { %v4129_v28 = vpop.eup %4128 }
 0xbf6   :  { %v4131_v29 = vpop.eup %4130  ;;  %v2575_v30 = vmul.f32 1.442695, %v2560_v27  ;;  %3948 = vmatmul.mubr.msk.f32.vlgmr.msra.gmra.mrb[26].mxu1 %vm164_vm2, %v4129_v28  ;;  %v2580_v31 = vsel %vm164_vm2, %v4129_v28, 0.0 }
 0xbf7   :  { %3953 = vmatmul.mubr.msk.f32.vlgmr.msra.gmra.mrb[32].mxu0 %vm164_vm2, %v4131_v29  ;;  %3956 = vmatpush3.msra.mxu1 %v2830_v2  ;;  %v2583_v32 = vsel %vm164_vm2, %v4131_v29, 0.0  ;;  %v3058_v38 = vpop.permute.xlu0 %3057 }
 0xbf8   :  { %4140 = vpow2.f32 %v2575_v30  ;;  %3961 = vmatpush3.msra.mxu0 %v4583_v33  ;;  %2581 = vadd.xlane.f32.xlu0 %v2580_v31 }
 0xbf9   :  { %v4133_v34 = vpop.eup %4132  ;;  %2584 = vadd.xlane.f32.xlu1 %v2583_v32  ;;  %3957 = vmatprep.mubr.msk.f32.mxu1 %vm4193_vm1, %v4190_v10 }
 0xbfa   :  { %v4135_v35 = vpop.eup %4134  ;;  %3962 = vmatprep.mubr.msk.f32.mxu0 %vm4193_vm1, %v4190_v10  ;;  %3965 = vmatprep.subr.mxu1 %v4190_v10  ;;  %v2586_v36 = vsel %vm164_vm2, %v4133_v34, 0.0 }
 0xbfb   :  { %3970 = vmatprep.subr.mxu0 %v4190_v10  ;;  %3958 = vmatmul.mubr.msk.f32.vlgmr.msra.gmra.mrb[28].mxu1 %vm164_vm2, %v4133_v34  ;;  %v2589_v45 = vsel %vm164_vm2, %v4135_v35, 0.0 }
 0xbfc   :  { %3963 = vmatmul.mubr.msk.f32.vlgmr.msra.gmra.mrb[34].mxu0 %vm164_vm2, %v4135_v35  ;;  %3966 = vmatpush3.msra.mxu1 %v2982_v63 }
 0xbfd   :  { %v4137_v33 = vpop.eup %4136  ;;  %3971 = vmatpush3.msra.mxu0 %v3058_v38  ;;  %2587 = vadd.xlane.f32.xlu0 %v2586_v36 }
 0xbfe   :  { %v4139_v39 = vpop.eup %4138  ;;  %3967 = vmatprep.mubr.msk.f32.mxu1 %vm4193_vm1, %v4190_v10  ;;  %3972 = vmatprep.mubr.msk.f32.mxu0 %vm4193_vm1, %v4190_v10  ;;  %v2595_v37 = vsel %vm164_vm2, %v4137_v33, 0.0 }
 0xbff   :  { %3975 = vmatprep.subr.mxu1 %v4190_v10  ;;  %3968 = vmatmul.mubr.msk.f32.vlgmr.msra.gmra.mrb[30].mxu1 %vm164_vm2, %v4139_v39  ;;  %v2592_v41 = vsel %vm164_vm2, %v4139_v39, 0.0 }
 0xc00   :  { %3973 = vmatmul.mubr.msk.f32.vlgmr.msra.gmra.mrb[36].mxu0 %vm164_vm2, %v4137_v33  ;;  %3976 = vmatpush3.msra.mxu1 %v3134_v40 }
 0xc01   :  { %2593 = vadd.xlane.f32.xlu0 %v2592_v41  ;;  %2596 = vadd.xlane.f32.xlu1 %v2595_v37 }
 0xc02   :  { %v4141_v42 = vpop.eup %4140  ;;  %3977 = vmatprep.mubr.msk.f32.mxu1 %vm4193_vm1, %v4190_v10 }
 0xc03   :  { %3978 = vmatmul.mubr.msk.f32.vlgmr.msra.gmra.mrb[32].mxu1 %vm164_vm2, %v4141_v42  ;;  %v2598_v43 = vsel %vm164_vm2, %v4141_v42, 0.0 }
 0xc05   :  { %2599 = vadd.xlane.f32.xlu0 %v2598_v43  ;;  %2578 = vadd.xlane.f32.xlu1 %v2577_v44 }
 0xc09   :  { %2590 = vadd.xlane.f32.xlu0 %v2589_v45 }
 0xc5e   :  { %v2673_v46 = vpop.f32.mrb[30].mxu0 }
 0xc5f   :  { %v3944_v47 = vpop.f32.mrb[31].mxu0 }
 0xc85   :  { %v2582_v48 = vpop.xlane.xlu0 %2581 }
 0xc86   :  { %4142 = vrcp.f32 %v2582_v48  ;;  %v2585_v50 = vpop.xlane.xlu1 %2584 }
 0xc87   :  { %4144 = vrcp.f32 %v2585_v50 }
 0xc8a   :  { %v2588_v49 = vpop.xlane.xlu0 %2587 }
 0xc8e   :  { %v2594_v10 = vpop.xlane.xlu0 %2593  ;;  %v2597_v5 = vpop.xlane.xlu1 %2596 }
 0xc8f   :  { %4146 = vrcp.f32 %v2594_v10  ;;  %v3638_v10 = vld [vmem:[%s4748_s5 + $0x30] sm:$0xff] }
 0xc90   :  { %v4143_v7 = vpop.eup %4142  ;;  %4148 = vrcp.f32 %v2597_v5  ;;  %v3639_v5 = vld [vmem:[%s4748_s5 + $0x38] sm:$0xff] }
 0xc91   :  { %4150 = vrcp.f32 %v2588_v49  ;;  %v4145_v57 = vpop.eup %4144  ;;  %v3637_v49 = vld [vmem:[%s4748_s5 + $0x28] sm:$0xff] }
 0xc92   :  { %v2600_v51 = vpop.xlane.xlu0 %2599  ;;  %v2579_v18 = vpop.xlane.xlu1 %2578 }
 0xc93   :  { %4152 = vrcp.f32 %v2600_v51  ;;  %v3644_v51 = vld [vmem:[%s4750_s7 + $0x40] sm:$0xff] }
 0xc94   :  { %4154 = vrcp.f32 %v2579_v18  ;;  %v3651_v18 = vld [vmem:[%s4750_s7 + $0x78] sm:$0xff] }
 0xc96   :  { %v2591_v19 = vpop.xlane.xlu0 %2590 }
 0xc97   :  { %4156 = vrcp.f32 %v2591_v19 }
 0xc99   :  { %v4147_v63 = vpop.eup %4146 }
 0xc9a   :  { %v4149_v1 = vpop.eup %4148 }
 0xc9b   :  { %v4151_v12 = vpop.eup %4150 }
 0xc9d   :  { %v4153_v13 = vpop.eup %4152 }
 0xc9e   :  { %v4155_v22 = vpop.eup %4154 }
 0xc9f   :  { %v3210_v26 = vmul.f32 %v4155_v22, %v2673_v46 }
 0xca1   :  { %v4157_v23 = vpop.eup %4156 }
 0xcc9   :  { %v2749_v52 = vpop.f32.mrb[26].mxu1 }
 0xcca   :  { %v3212_v53 = vmul.f32 %v4143_v7, %v2749_v52  ;;  %v2825_v54 = vpop.f32.mrb[32].mxu0  ;;  %v3949_v55 = vpop.f32.mrb[27].mxu1  ;;  %v4054_v7 = vpack.c.bf16 %v3639_v5, %v3638_v10  ;;  %v3645_v52 = vld [vmem:[%s4750_s7 + $0x48] sm:$0xff]  ;;  %v3657_v10 = vld [vmem:[%s4752_s9 + $0x1] ss:$0 sm:$0xff] }
 0xccb   :  { %v3954_v56 = vpop.f32.mrb[33].mxu0  ;;  %v3214_v58 = vmul.f32 %v4145_v57, %v2825_v54  ;;  %v4058_v54 = vpack.c.bf16 %v3645_v52, %v3644_v51  ;;  %v3647_v55 = vld [vmem:[%s4750_s7 + $0x58] sm:$0xff]  ;;  %v3648_v57 = vld [vmem:[%s4750_s7 + $0x60] sm:$0xff] }
 0xccc   :  { %3227 = vrot.lane.b32.xlu1 %v3212_v53, %s4197_s16  ;;  %v3646_v53 = vld [vmem:[%s4750_s7 + $0x50] sm:$0xff]  ;;  %v3659_v52 = vld [vmem:[%s4753_s10 + $0x1] ss:$0 sm:$0xff] }
 0xccd   :  { %v4062_v56 = vpack.c.bf16 %v3647_v55, %v3646_v53  ;;  %4059 = vmatprep.subr.bf16.mxu1 %v4058_v54 }
 0xcce   :  { %v2901_v59 = vpop.f32.mrb[28].mxu1  ;;  %4061 = vmatpush3.bf16.msra.mxu1 %v4058_v54 }
 0xccf   :  { %v2977_v60 = vpop.f32.mrb[34].mxu0  ;;  %v3959_v61 = vpop.f32.mrb[29].mxu1  ;;  %v3216_v15 = vmul.f32 %v4151_v12, %v2901_v59  ;;  %4063 = vmatprep.subr.bf16.mxu1 %v4062_v56 }
 0xcd0   :  { %v3964_v62 = vpop.f32.mrb[35].mxu0  ;;  %3235 = vrot.lane.b32.xlu1 %v3214_v58, %s4198_s17  ;;  %v3218_v24 = vmul.f32 %v4157_v23, %v2977_v60  ;;  %v3649_v58 = vld [vmem:[%s4750_s7 + $0x68] sm:$0xff] }
 0xcd1   :  { %v4066_v59 = vpack.c.bf16 %v3649_v58, %v3648_v57 }
 0xcd2   :  { %v3053_v0 = vpop.f32.mrb[30].mxu1  ;;  %4065 = vmatpush3.bf16.msra.mxu1 %v4062_v56 }
 0xcd3   :  { %v3220_v2 = vmul.f32 %v4147_v63, %v3053_v0  ;;  %v3129_v6 = vpop.f32.mrb[36].mxu0  ;;  %v3969_v8 = vpop.f32.mrb[31].mxu1  ;;  %4067 = vmatprep.subr.bf16.mxu1 %v4066_v59 }
 0xcd4   :  { %v3222_v9 = vmul.f32 %v4149_v1, %v3129_v6  ;;  %v3974_v11 = vpop.f32.mrb[37].mxu0  ;;  %v3633_v6 = vld [vmem:[%s4746_s3 + $0x1] ss:$0 sm:$0xff] }
 0xcd5   :  { %3229 = vrot.lane.b32.xlu0 %v3220_v2, %s4197_s16 }
 0xcd6   :  { %3237 = vrot.lane.b32.xlu1 %v3222_v9, %s4198_s17  ;;  %v3205_v14 = vpop.f32.mrb[32].mxu1  ;;  %4069 = vmatpush3.bf16.msra.mxu1 %v4066_v59  ;;  %v3635_v9 = vld [vmem:[%s4747_s4 + $0x1] ss:$0 sm:$0xff] }
 0xcd7   :  { %v3224_v16 = vmul.f32 %v4153_v13, %v3205_v14  ;;  %v3979_v17 = vpop.f32.mrb[33].mxu1 }
 0xcd8   :  { %v3650_v17 = vld [vmem:[%s4750_s7 + $0x70] sm:$0xff] }
 0xcd9   :  { %3243 = vrot.lane.b32.xlu0 %v3216_v15, %s4199_s18  ;;  %v4070_v19 = vpack.c.bf16 %v3651_v18, %v3650_v17 }
 0xcda   :  { %3245 = vrot.lane.b32.xlu1 %v3224_v16, %s4199_s18 }
 0xcdb   :  { %4071 = vmatprep.subr.bf16.mxu1 %v4070_v19 }
 0xcdc   :  { %4073 = vmatpush3.bf16.msra.mxu1 %v4070_v19 }
 0xd3e   :  { %v3228_v20 = vpop.permute.xlu1 %3227 }
 0xd3f   :  { %v3249_v29 = vsel %vm164_vm2, %v3210_v26, %v3228_v20  ;;  %v3641_v20 = vld [vmem:[%s4749_s6 + $0x1] ss:$0 sm:$0xff] }
 0xd42   :  { %v3236_v21 = vpop.permute.xlu1 %3235 }
 0xd43   :  { %v3251_v30 = vsel %vm1501_vm3, %v3249_v29, %v3236_v21 }
 0xd47   :  { %v3230_v25 = vpop.permute.xlu0 %3229 }
 0xd48   :  { %v3238_v27 = vpop.permute.xlu1 %3237  ;;  %v3250_v28 = vsel %vm164_vm2, %v3218_v24, %v3230_v25 }
 0xd49   :  { %v3252_v32 = vsel %vm1501_vm3, %v3250_v28, %v3238_v27  ;;  %v3653_v27 = vld [vmem:[%s4751_s8 + $0x1] ss:$0 sm:$0xff] }
 0xd4b   :  { %v3244_v31 = vpop.permute.xlu0 %3243 }
 0xd4c   :  { %v3253_v34 = vsel %vm1504_vm4, %v3251_v30, %v3244_v31  ;;  %v3246_v35 = vpop.permute.xlu1 %3245 }
 0xd4d   :  { %v3254_v36 = vsel %vm1504_vm4, %v3252_v32, %v3246_v35  ;;  %v3255_v38 = vadd.f32 %v3253_v34, %v4514_v3 }
 0xd4e   :  { %v3256_v33 = vadd.f32 %v3254_v36, %v4516_v4  ;;  %v3636_v4 = vld [vmem:[%s4748_s5 + $0x20] sm:$0xff] }
 0xd4f   :  { %v3257_v39 = vsel %vm52_vm0, %v3255_v38, 0.0  ;;  %v4050_v50 = vpack.c.bf16 %v3637_v49, %v3636_v4 }
 0xd50   :  { %3258 = vadd.xlane.f32.xlu0 %v3257_v39  ;;  %v3260_v37 = vsel %vm52_vm0, %v3256_v33, 0.0 }
 0xd51   :  { %3261 = vadd.xlane.f32.xlu1 %v3260_v37  ;;  %4051 = vmatprep.subr.bf16.mxu0 %v4050_v50 }
 0xd52   :  { %4053 = vmatpush3.bf16.msra.mxu0 %v4050_v50 }
 0xd53   :  { %4055 = vmatprep.subr.bf16.mxu0 %v4054_v7 }
 0xd56   :  { %4057 = vmatpush3.bf16.msra.mxu0 %v4054_v7 }
 0xddd   :  { %v3259_v40 = vpop.xlane.xlu0 %3258 }
 0xdde   :  { %v3263_v41 = vmul.f32 0.03125, %v3259_v40  ;;  %v3262_v42 = vpop.xlane.xlu1 %3261 }
 0xddf   :  { %v3264_v43 = vmul.f32 0.03125, %v3262_v42 }
 0xde0   :  { %v3265_v44 = vsub.f32 %v3255_v38, %v3263_v41 }
 0xde1   :  { %v3266_v45 = vsub.f32 %v3256_v33, %v3264_v43 }
 0xde2   :  { %v3267_v46 = vmul.f32 %v3265_v44, %v3265_v44 }
 0xde3   :  { %v3268_v48 = vmul.f32 %v3266_v45, %v3266_v45 }
 0xde4   :  { %v3269_v47 = vsel %vm52_vm0, %v3267_v46, 0.0 }
 0xde5   :  { %3270 = vadd.xlane.f32.xlu0 %v3269_v47  ;;  %v3272_v3 = vsel %vm52_vm0, %v3268_v48, 0.0 }
 0xde9   :  { %3273 = vadd.xlane.f32.xlu0 %v3272_v3 }
 0xe72   :  { %v3271_v60 = vpop.xlane.xlu0 %3270 }
 0xe73   :  { %v3275_v61 = vmul.f32 0.03125, %v3271_v60 }
 0xe75   :  { %v3277_v62 = vadd.f32 1e-05, %v3275_v61 }
 0xe76   :  { %v3274_v63 = vpop.xlane.xlu0 %3273 }
 0xe77   :  { %4158 = vrsqrt.f32 %v3277_v62  ;;  %v3276_v0 = vmul.f32 0.03125, %v3274_v63 }
 0xe79   :  { %v3278_v1 = vadd.f32 1e-05, %v3276_v0 }
 0xe7b   :  { %4160 = vrsqrt.f32 %v3278_v1 }
 0xe81   :  { %v4159_v2 = vpop.eup %4158 }
 0xe82   :  { %v3281_v8 = vmul.f32 %v4159_v2, %v3265_v44 }
 0xe84   :  { %v3291_v11 = vmul.f32 %v3633_v6, %v3281_v8 }
 0xe85   :  { %v4161_v12 = vpop.eup %4160 }
 0xe86   :  { %v3282_v13 = vmul.f32 %v4161_v12, %v3266_v45  ;;  %v3301_v14 = vadd.f32 %v3635_v9, %v3291_v11 }
 0xe88   :  { %v3292_v15 = vmul.f32 %v3633_v6, %v3282_v13  ;;  %3988 = vmatprep.mubr.msk.f32.mxu0 %vm52_vm0, %v3301_v14 }
 0xe8a   :  { %v3302_v16 = vadd.f32 %v3635_v9, %v3292_v15 }
 0xe8c   :  { %3989 = vmatmul.mubr.msk.f32.vlgmr.msra.gmra.mrb[38].mxu0 %vm52_vm0, %v3302_v16 }
 0xf5f   :  { %v3990_v21 = vpop.f32.mrb[38].mxu0 }
 0xf60   :  { %v3394_v22 = vadd.f32 %v3990_v21, %v3641_v20  ;;  %v3388_v23 = vpop.f32.mrb[39].mxu0 }
 0xf61   :  { %v3389_v24 = vadd.f32 %v3641_v20, %v3388_v23 }
 0xf62   :  { %v3398_v26 = vmax.f32 %v3394_v22, 0.0 }
 0xf63   :  { %v3397_v25 = vmax.f32 %v3389_v24, 0.0 }
 0xf65   :  { %4007 = vmatprep.mubr.msk.f32.mxu1 %vm1663_vm5, %v3397_v25 }
 0xf66   :  { %4008 = vmatmul.mubr.msk.f32.vlgmr.msra.gmra.mrb[34].mxu1 %vm1663_vm5, %v3398_v26 }
0x1039   :  { %v4009_v28 = vpop.f32.mrb[34].mxu1 }
0x103a   :  { %v3494_v29 = vadd.f32 %v4009_v28, %v3653_v27  ;;  %v3488_v30 = vpop.f32.mrb[35].mxu1 }
0x103b   :  { %v3489_v31 = vadd.f32 %v3653_v27, %v3488_v30 }
0x103c   :  { %v3498_v32 = vadd.f32 %v3494_v29, %v3302_v16 }
0x103d   :  { %v3497_v34 = vadd.f32 %v3489_v31, %v3301_v14 }
0x103e   :  { %v3502_v35 = vsel %vm52_vm0, %v3498_v32, 0.0 }
0x103f   :  { %3503 = vadd.xlane.f32.xlu0 %v3502_v35  ;;  %v3499_v36 = vsel %vm52_vm0, %v3497_v34, 0.0 }
0x1040   :  { %3500 = vadd.xlane.f32.xlu1 %v3499_v36 }
0x10cc   :  { %v3504_v38 = vpop.xlane.xlu0 %3503 }
0x10cd   :  { %v3506_v33 = vmul.f32 0.03125, %v3504_v38  ;;  %v3501_v39 = vpop.xlane.xlu1 %3500 }
0x10ce   :  { %v3505_v37 = vmul.f32 0.03125, %v3501_v39 }
0x10cf   :  { %v3508_v40 = vsub.f32 %v3498_v32, %v3506_v33 }
0x10d0   :  { %v3507_v41 = vsub.f32 %v3497_v34, %v3505_v37 }
0x10d1   :  { %v3510_v42 = vmul.f32 %v3508_v40, %v3508_v40 }
0x10d2   :  { %v3509_v43 = vmul.f32 %v3507_v41, %v3507_v41 }
0x10d3   :  { %v3514_v44 = vsel %vm52_vm0, %v3510_v42, 0.0 }
0x10d4   :  { %3515 = vadd.xlane.f32.xlu0 %v3514_v44  ;;  %v3511_v45 = vsel %vm52_vm0, %v3509_v43, 0.0 }
0x10d5   :  { %3512 = vadd.xlane.f32.xlu1 %v3511_v45 }
0x1161   :  { %v3516_v46 = vpop.xlane.xlu0 %3515 }
0x1162   :  { %v3518_v47 = vmul.f32 0.03125, %v3516_v46  ;;  %v3513_v48 = vpop.xlane.xlu1 %3512 }
0x1163   :  { %v3517_v3 = vmul.f32 0.03125, %v3513_v48 }
0x1164   :  { %v3520_v4 = vadd.f32 1e-05, %v3518_v47 }
0x1165   :  { %v3519_v49 = vadd.f32 1e-05, %v3517_v3 }
0x1166   :  { %4162 = vrsqrt.f32 %v3520_v4 }
0x1167   :  { %4164 = vrsqrt.f32 %v3519_v49 }
0x1170   :  { %v4163_v50 = vpop.eup %4162 }
0x1171   :  { %v4165_v5 = vpop.eup %4164  ;;  %v3524_v7 = vmul.f32 %v4163_v50, %v3508_v40 }
0x1172   :  { %v3523_v51 = vmul.f32 %v4165_v5, %v3507_v41 }
0x1173   :  { %v3534_v53 = vmul.f32 %v3657_v10, %v3524_v7 }
0x1174   :  { %v3533_v54 = vmul.f32 %v3657_v10, %v3523_v51 }
0x1175   :  { %v3544_v55 = vadd.f32 %v3659_v52, %v3534_v53 }
0x1176   :  { %v3543_v56 = vadd.f32 %v3659_v52, %v3533_v54 }
0x1177   :  { %3546 = vst.msk [vmem:[#allocation2 + $0x8] sm:$0xff] %vm52_vm0, %v3544_v55 }
0x1178   :  { %3545 = vst.msk [vmem:[#allocation2] sm:$0xff] %vm52_vm0, %v3543_v56 }
0x1179   :  { %4177 = shalt.err (!%p4174_p4)
}
0x117a   :  { %s4178_s20 = scalar_lea.hbm %s4754_s11, 256 }
0x117b   :  { %p4179_p5 = scmp.ne.s32.totalorder %s4754_s11, %s4178_s20  ;;  %p4182_p6 = scmp.lt.u32.totalorder %s4178_s20, %s4754_s11 }
0x117d   :  { %p4184_p7 = pnand %p4182_p6, %p4179_p5 }
0x117f   :  { %4187 = shalt.err (!%p4184_p7)
}
0x1180   :  { %s4201_s24 = smov 128  }
0x1181   :  { %3558 = dma.vmem_to_hbm [thread:$0]  %s3553_s30, 256, %s4754_s11, [#allocation3], %s4201_s24, %s4201_s24, %s4197_s16  }
0x1182   :  { %4188 = dma.done.wait [#allocation3], 256  }
0x1183   :  { %4189 = vsyncadd [#allocation3], 4294967040 }
0x1184   :  { %3562 = vsyncpa [#allocation3], 1 }

</bundles_post_ra>
